<compile_context>
chip_gen: v5e
topology: v5e:2x2
jax: 0.10.0
libtpu: 0.0.40
codegen_flags: <defaults>
</compile_context>

<pallas_src>
import numpy as np
import jax
import jax.numpy as jnp
from jax.experimental import pallas as pl
from jax.experimental.pallas import tpu as pltpu

LN_EPS = 1e-5          # torch nn.LayerNorm default eps
KERNEL_EPS = 1e-3      # Performer generalized-kernel epsilon
MXU_DTYPE = jnp.bfloat16   # MXU operand dtype; accumulation & elementwise = f32
OUT_LANE_PAD = 128     # lane-dense output slab width (sliced back in wrapper)


# ------------------------------ fused kernel -------------------------------- #

def _mxu(a, b):
    # bf16 operands on the MXU, f32 accumulation.
    return jnp.dot(a.astype(MXU_DTYPE), b.astype(MXU_DTYPE),
                   preferred_element_type=jnp.float32)


def _ln_norm(x):
    # LayerNorm normalization only; the affine (gamma/beta) is folded into the
    # following Linear's weight/bias at prepare time.
    mu = jnp.mean(x, axis=-1, keepdims=True)
    var = jnp.mean(jnp.square(x - mu), axis=-1, keepdims=True)
    return (x - mu) * jax.lax.rsqrt(var + LN_EPS)


def _make_encoder_kernel(ord_outs, feat_width, has_uplift):
    """Fused per-batch kernel: input Linear -> [LN -> kernel self-attn ->
    optional 1->k uplift -> Wo -> FFN]*L -> LN -> output Linear.
    One grid step == one batch element; all intermediates stay in VMEM/vregs.
    """
    n_layers = len(ord_outs)
    F = feat_width

    def kernel(*refs):
        it = iter(refs)
        x_ref = next(it)                         # [N, dim_in] (batch squeezed)
        w_in = next(it)[...]
        b_in = next(it)[...]
        hmask = next(it)[...]                    # [F, dim_v] block-diag head mask
        onehot = next(it)[...] if has_uplift else None   # [M, N] k-tuple one-hot
        layers = [[next(it)[...] for _ in range(8)] for _ in range(n_layers)]
        w_out = next(it)[...]
        b_out = next(it)[...]
        o_ref = next(it)

        # input order-1 "light" Linear (+ Dropout(p=0) == identity)
        x = _mxu(x_ref[...], w_in) + b_in                     # [N, H] f32

        for lp, ord_out in zip(layers, ord_outs):
            (w_qkv, b_qkv, wo, bo, w1, bf1, w2, bf2) = lp

            # ---- LN (affine folded) + fused QKV projection ----
            # The Performer feature-map projection (pre-scaled by dqk**-0.25)
            # is folded into the Q/K columns of w_qkv, so the matmul output is
            # directly [qp_pre | kp_pre | v].
            h = _ln_norm(x)
            qkv = _mxu(h, w_qkv) + b_qkv                      # [N, 2F + dim_v]
            qp = jax.nn.relu(qkv[:, :F]) + KERNEL_EPS         # [N, F]
            kp = jax.nn.relu(qkv[:, F:2 * F]) + KERNEL_EPS    # [N, F]
            v = qkv[:, 2 * F:]                                # [N, dim_v]

            # ctx[f, d] = sum_n kp[n, f] * v[n, d] — transposed-LHS bf16 MXU
            # matmul (no f32 MXU passes, no XLU transpose of kp).
            ctx = jax.lax.dot_general(
                kp.astype(MXU_DTYPE), v.astype(MXU_DTYPE),
                dimension_numbers=(((0,), (0,)), ((), ())),
                preferred_element_type=jnp.float32)           # [F, dim_v]
            ksum = jnp.sum(kp, axis=0, keepdims=True)         # [1, F]
            # Head structure enforced by the block-diagonal mask; both the
            # numerator and the denominator reductions go through the MXU.
            num = _mxu(qp, ctx * hmask)                       # [N, dim_v]
            den = _mxu(qp * ksum, hmask)                      # [N, dim_v]
            feat = num * pl.reciprocal(den, approx=True)

            if ord_out > 1:
                # TODO(synk): exact 1->k KernelSelfAttn semantics of
                # hot_pytorch are not available; implemented as an unordered
                # sum-pool of per-node attention features over each k-tuple.
                feat = _mxu(onehot, feat)                     # [M, dim_v]

            # attention output projection; EncLayer.residual == False -> x = h
            x = _mxu(feat, wo) + bo                           # [T, H]

            # ---- FFN with residual: x + W2 gelu(W1 LN(x) + b1) + b2 ----
            # (LN2 affine folded into w1/bf1.)
            h = _ln_norm(x)
            h = _mxu(h, w1) + bf1
            # TODO(synk): torch nn.GELU() is the exact erf GELU; tanh
            # approximation used for Mosaic-safe elementwise lowering.
            h = jax.nn.gelu(h, approximate=True)
            x = x + _mxu(h, w2) + bf2

        # ---- output head: LN (affine folded) + Linear (lane-padded) ----
        o_ref[...] = _mxu(_ln_norm(x), w_out) + b_out

    return kernel


# ----------------------------- parameters / glue ---------------------------- #

def init_params(key, *, dim_in, dim_hidden, dim_qk, dim_v, dim_ff, dim_out,
                n_heads, n_layers):
    # Block-diagonal head batching needs head-divisible qk/v dims (degenerate
    # feat_dim=1 fallback of the torch module is not supported here).
    assert dim_qk % n_heads == 0 and dim_v % n_heads == 0

    keys = iter(jax.random.split(key, 8 + 16 * n_layers))

    def dense(fin, fout):
        w = jax.random.normal(next(keys), (fin, fout), jnp.float32) / jnp.sqrt(fin)
        b = 0.01 * jax.random.normal(next(keys), (1, fout), jnp.float32)
        return w, b

    p = {}
    p['w_in'], p['b_in'] = dense(dim_in, dim_hidden)          # input "light" Linear
    dqk = dim_qk // n_heads
    feat_dim = dim_qk // n_heads if dim_qk >= n_heads else 1
    # KernelFeatureMap projection, shared across layers/heads.
    # TODO(synk): the torch module redraws this projection every forward
    # (redraw_projections); here it is drawn once, deterministically.
    p['proj'] = jax.random.normal(next(keys), (dqk, feat_dim), jnp.float32)

    layers = []
    for _ in range(n_layers):
        lp = {}
        lp['g1'] = jnp.ones((1, dim_hidden), jnp.float32)
        lp['be1'] = jnp.zeros((1, dim_hidden), jnp.float32)
        lp['wq'], lp['bq'] = dense(dim_hidden, dim_qk)
        lp['wk'], lp['bk'] = dense(dim_hidden, dim_qk)
        lp['wv'], lp['bv'] = dense(dim_hidden, dim_v)
        lp['wo'], lp['bo'] = dense(dim_v, dim_hidden)
        lp['g2'] = jnp.ones((1, dim_hidden), jnp.float32)
        lp['be2'] = jnp.zeros((1, dim_hidden), jnp.float32)
        lp['w1'], lp['bf1'] = dense(dim_hidden, dim_ff)
        lp['w2'], lp['bf2'] = dense(dim_ff, dim_hidden)
        layers.append(lp)
    p['layers'] = layers

    p['g_out'] = jnp.ones((1, dim_hidden), jnp.float32)
    p['be_out'] = jnp.zeros((1, dim_hidden), jnp.float32)
    p['w_out'], p['b_out'] = dense(dim_hidden, dim_out)
    return p


def _check_indices(indices):
    if indices is not None:
        k = indices.shape[1]
        arr = np.asarray(indices)
        ok = all(len(set(row.tolist())) == k for row in arr)
        assert ok, ('This extension is only for 1->k-uniform, '
                    'but given indices contain loops')


def prepare_encoder(params, indices, *, n_heads, ord_outs, n_nodes):
    """One-time (hoisted off the forward path) weight preparation:
      * LayerNorm affine folded into the following Linear (W' = g*W, b' = be@W+b)
      * Performer feature map (pre-scaled by dqk**-0.25) folded into Wq/Wk
      * Q/K/V fused into one [H, 2F + dim_v] weight + bias
      * per-batch [M, N] one-hot built once (no kron'd block-diagonal; nothing
        built when no layer uplifts)
      * bf16 casts for MXU weight operands; lane-padded (128) output head
    """
    _check_indices(indices)
    ord_outs = tuple(int(o) for o in ord_outs)
    assert all(o == 1 for o in ord_outs[:-1]), \
        'only the last EncLayer may uplift (1->k), as in the torch module'

    H = params['w_in'].shape[1]
    dim_qk = params['layers'][0]['wq'].shape[1]
    dim_v = params['layers'][0]['wv'].shape[1]
    dim_out = params['w_out'].shape[1]
    dqk = dim_qk // n_heads
    dv = dim_v // n_heads
    feat_dim = params['proj'].shape[1]
    F = n_heads * feat_dim

    # Feature-map projection: block-diagonal across heads, pre-scaled by
    # dqk**-0.25 so neither q nor k needs in-kernel scaling.
    proj_bd = jnp.kron(jnp.eye(n_heads, dtype=jnp.float32),
                       params['proj'] * (float(dqk) ** -0.25))   # [dim_qk, F]
    # hmask[f, d] = 1 iff feature column f and value column d belong to the
    # same head: full-width masked matmuls reproduce per-head attention.
    hmask = jnp.kron(jnp.eye(n_heads, dtype=jnp.float32),
                     jnp.ones((feat_dim, dv), jnp.float32))      # [F, dim_v]

    def fold_ln(g, be, w, b):
        # (norm(x)*g + be) @ W + b == norm(x) @ (g.T * W) + (be @ W + b)
        return g.reshape(-1, 1) * w, be @ w + b

    layers = []
    for lp in params['layers']:
        wq, bq = fold_ln(lp['g1'], lp['be1'], lp['wq'], lp['bq'])
        wk, bk = fold_ln(lp['g1'], lp['be1'], lp['wk'], lp['bk'])
        wv, bv = fold_ln(lp['g1'], lp['be1'], lp['wv'], lp['bv'])
        wq, bq = wq @ proj_bd, bq @ proj_bd            # fold feature map into Q
        wk, bk = wk @ proj_bd, bk @ proj_bd            # fold feature map into K
        w1, bf1 = fold_ln(lp['g2'], lp['be2'], lp['w1'], lp['bf1'])
        layers.append(dict(
            w_qkv=jnp.concatenate([wq, wk, wv], axis=1).astype(MXU_DTYPE),
            b_qkv=jnp.concatenate([bq, bk, bv], axis=1),
            wo=lp['wo'].astype(MXU_DTYPE), bo=lp['bo'],
            w1=w1.astype(MXU_DTYPE), bf1=bf1,
            w2=lp['w2'].astype(MXU_DTYPE), bf2=lp['bf2']))

    w_out, b_out = fold_ln(params['g_out'], params['be_out'],
                           params['w_out'], params['b_out'])
    # Lane-dense (128-wide) output head; sliced back to dim_out in the wrapper.
    w_out_pad = jnp.zeros((H, OUT_LANE_PAD), jnp.float32).at[:, :dim_out].set(w_out)
    b_out_pad = jnp.zeros((1, OUT_LANE_PAD), jnp.float32).at[:, :dim_out].set(b_out)

    has_uplift = ord_outs[-1] > 1
    if has_uplift:
        onehot = jnp.sum(jax.nn.one_hot(indices, n_nodes, dtype=jnp.float32),
                         axis=1).astype(MXU_DTYPE)               # [M, N]
        out_rows = int(indices.shape[0])
    else:
        onehot = None
        out_rows = int(n_nodes)

    return dict(
        w_in=params['w_in'].astype(MXU_DTYPE), b_in=params['b_in'],
        hmask=hmask, onehot=onehot, layers=layers,
        w_out=w_out_pad.astype(MXU_DTYPE), b_out=b_out_pad,
        ord_outs=ord_outs, has_uplift=has_uplift,
        feat_width=int(F), dim_v=int(dim_v), dim_out=int(dim_out),
        n_nodes=int(n_nodes), out_rows_per_batch=out_rows)


def encoder_forward(prep, x):
    B, N, dim_in = x.shape
    assert N == prep['n_nodes']
    T = prep['out_rows_per_batch']

    def wspec(a):
        # Weights/biases are all 2-D, VMEM-resident across the whole grid.
        return pl.BlockSpec(a.shape, lambda b: (0, 0))

    inputs = [x, prep['w_in'], prep['b_in'], prep['hmask']]
    in_specs = [pl.BlockSpec((None, N, dim_in), lambda b: (b, 0, 0)),
                wspec(prep['w_in']), wspec(prep['b_in']), wspec(prep['hmask'])]
    if prep['has_uplift']:
        inputs.append(prep['onehot'])
        in_specs.append(wspec(prep['onehot']))
    for lp in prep['layers']:
        for name in ('w_qkv', 'b_qkv', 'wo', 'bo', 'w1', 'bf1', 'w2', 'bf2'):
            inputs.append(lp[name])
            in_specs.append(wspec(lp[name]))
    inputs += [prep['w_out'], prep['b_out']]
    in_specs += [wspec(prep['w_out']), wspec(prep['b_out'])]

    kernel = _make_encoder_kernel(prep['ord_outs'], prep['feat_width'],
                                  prep['has_uplift'])

    # Size the scoped VMEM limit from the actual operand footprint (weights are
    # resident; activations are per-batch), with generous headroom.
    total_bytes = sum(int(a.size) * a.dtype.itemsize for a in inputs)
    total_bytes += B * T * OUT_LANE_PAD * 4
    vmem_limit = int(min(100 * 1024 * 1024, max(4 * 1024 * 1024, 4 * total_bytes)))

    out = pl.pallas_call(
        kernel,
        grid=(B,),
        in_specs=in_specs,
        out_specs=pl.BlockSpec((None, T, OUT_LANE_PAD), lambda b: (b, 0, 0)),
        out_shape=jax.ShapeDtypeStruct((B, T, OUT_LANE_PAD), jnp.float32),
        compiler_params=pltpu.CompilerParams(
            dimension_semantics=("parallel",),
            vmem_limit_bytes=vmem_limit),
    )(*inputs)

    return out[:, :, :prep['dim_out']]


# ---------------------------------- main ----------------------------------- #

if __name__ == "__main__":
    key = jax.random.PRNGKey(0)
    kx, kp = jax.random.split(key)

    # small shapes consistent with the module
    B, N = 2, 8
    dim_in, dim_hidden = 16, 32
    dim_qk, dim_v, dim_ff, dim_out = 32, 32, 64, 16
    n_heads = 4
    ord_hidden, ord_out = [1], 2
    ord_outs = ord_hidden + [ord_out]          # per-layer ord_out, as in Encoder

    x = jax.random.normal(kx, (B, N, dim_in), jnp.float32)
    # M=6 distinct-index 2-tuples (1->2-uniform)
    indices = jnp.array([[0, 1], [2, 3], [4, 5], [6, 7], [1, 4], [3, 6]],
                        dtype=jnp.int32)

    params = init_params(kp, dim_in=dim_in, dim_hidden=dim_hidden,
                         dim_qk=dim_qk, dim_v=dim_v, dim_ff=dim_ff,
                         dim_out=dim_out, n_heads=n_heads,
                         n_layers=len(ord_outs))

    # One-time weight folding/fusing (hoisted off the per-call critical path).
    prep = prepare_encoder(params, indices, n_heads=n_heads,
                           ord_outs=ord_outs, n_nodes=N)

    out = encoder_forward(prep, x)
    out = jax.block_until_ready(out)
    assert out.shape == (B, indices.shape[0], dim_out), out.shape
    assert bool(jnp.all(jnp.isfinite(out)))
    print("KERNEL_OK")
</pallas_src>

<mosaic_0001>
module attributes {stable_mosaic.version = 11 : i64} {
  func.func @kernel(%arg0: i32, %arg1: memref<1x8x16xf32, #tpu.memory_space<vmem>>, %arg2: memref<16x32xbf16, #tpu.memory_space<vmem>>, %arg3: memref<1x32xf32, #tpu.memory_space<vmem>>, %arg4: memref<32x32xf32, #tpu.memory_space<vmem>>, %arg5: memref<6x8xbf16, #tpu.memory_space<vmem>>, %arg6: memref<32x96xbf16, #tpu.memory_space<vmem>>, %arg7: memref<1x96xf32, #tpu.memory_space<vmem>>, %arg8: memref<32x32xbf16, #tpu.memory_space<vmem>>, %arg9: memref<1x32xf32, #tpu.memory_space<vmem>>, %arg10: memref<32x64xbf16, #tpu.memory_space<vmem>>, %arg11: memref<1x64xf32, #tpu.memory_space<vmem>>, %arg12: memref<64x32xbf16, #tpu.memory_space<vmem>>, %arg13: memref<1x32xf32, #tpu.memory_space<vmem>>, %arg14: memref<32x96xbf16, #tpu.memory_space<vmem>>, %arg15: memref<1x96xf32, #tpu.memory_space<vmem>>, %arg16: memref<32x32xbf16, #tpu.memory_space<vmem>>, %arg17: memref<1x32xf32, #tpu.memory_space<vmem>>, %arg18: memref<32x64xbf16, #tpu.memory_space<vmem>>, %arg19: memref<1x64xf32, #tpu.memory_space<vmem>>, %arg20: memref<64x32xbf16, #tpu.memory_space<vmem>>, %arg21: memref<1x32xf32, #tpu.memory_space<vmem>>, %arg22: memref<32x128xbf16, #tpu.memory_space<vmem>>, %arg23: memref<1x128xf32, #tpu.memory_space<vmem>>, %arg24: memref<1x6x128xf32, #tpu.memory_space<vmem>>) attributes {dimension_semantics = [#tpu.dimension_semantics<parallel>], iteration_bounds = array<i64: 2>, scalar_prefetch = 0 : i64, scratch_operands = 0 : i64, tpu.core_type = #tpu.core_type<tc>, window_params = [{transform_indices = @transform_0, window_bounds = array<i64: 1, 8, 16>}, {pipeline_mode = #tpu.pipeline_mode<synchronous>, transform_indices = @transform_1, window_bounds = array<i64: 16, 32>}, {pipeline_mode = #tpu.pipeline_mode<synchronous>, transform_indices = @transform_2, window_bounds = array<i64: 1, 32>}, {pipeline_mode = #tpu.pipeline_mode<synchronous>, transform_indices = @transform_3, window_bounds = array<i64: 32, 32>}, {pipeline_mode = #tpu.pipeline_mode<synchronous>, transform_indices = @transform_4, window_bounds = array<i64: 6, 8>}, {pipeline_mode = #tpu.pipeline_mode<synchronous>, transform_indices = @transform_5, window_bounds = array<i64: 32, 96>}, {pipeline_mode = #tpu.pipeline_mode<synchronous>, transform_indices = @transform_6, window_bounds = array<i64: 1, 96>}, {pipeline_mode = #tpu.pipeline_mode<synchronous>, transform_indices = @transform_7, window_bounds = array<i64: 32, 32>}, {pipeline_mode = #tpu.pipeline_mode<synchronous>, transform_indices = @transform_8, window_bounds = array<i64: 1, 32>}, {pipeline_mode = #tpu.pipeline_mode<synchronous>, transform_indices = @transform_9, window_bounds = array<i64: 32, 64>}, {pipeline_mode = #tpu.pipeline_mode<synchronous>, transform_indices = @transform_10, window_bounds = array<i64: 1, 64>}, {pipeline_mode = #tpu.pipeline_mode<synchronous>, transform_indices = @transform_11, window_bounds = array<i64: 64, 32>}, {pipeline_mode = #tpu.pipeline_mode<synchronous>, transform_indices = @transform_12, window_bounds = array<i64: 1, 32>}, {pipeline_mode = #tpu.pipeline_mode<synchronous>, transform_indices = @transform_13, window_bounds = array<i64: 32, 96>}, {pipeline_mode = #tpu.pipeline_mode<synchronous>, transform_indices = @transform_14, window_bounds = array<i64: 1, 96>}, {pipeline_mode = #tpu.pipeline_mode<synchronous>, transform_indices = @transform_15, window_bounds = array<i64: 32, 32>}, {pipeline_mode = #tpu.pipeline_mode<synchronous>, transform_indices = @transform_16, window_bounds = array<i64: 1, 32>}, {pipeline_mode = #tpu.pipeline_mode<synchronous>, transform_indices = @transform_17, window_bounds = array<i64: 32, 64>}, {pipeline_mode = #tpu.pipeline_mode<synchronous>, transform_indices = @transform_18, window_bounds = array<i64: 1, 64>}, {pipeline_mode = #tpu.pipeline_mode<synchronous>, transform_indices = @transform_19, window_bounds = array<i64: 64, 32>}, {pipeline_mode = #tpu.pipeline_mode<synchronous>, transform_indices = @transform_20, window_bounds = array<i64: 1, 32>}, {pipeline_mode = #tpu.pipeline_mode<synchronous>, transform_indices = @transform_21, window_bounds = array<i64: 32, 128>}, {pipeline_mode = #tpu.pipeline_mode<synchronous>, transform_indices = @transform_22, window_bounds = array<i64: 1, 128>}, {transform_indices = @transform_23, window_bounds = array<i64: 1, 6, 128>}]} {
    %c0 = arith.constant 0 : index
    %c0_0 = arith.constant 0 : index
    %0 = vector.load %arg2[%c0, %c0_0] : memref<16x32xbf16, #tpu.memory_space<vmem>>, vector<16x32xbf16>
    %c0_1 = arith.constant 0 : index
    %c0_2 = arith.constant 0 : index
    %1 = vector.load %arg3[%c0_1, %c0_2] : memref<1x32xf32, #tpu.memory_space<vmem>>, vector<1x32xf32>
    %c0_3 = arith.constant 0 : index
    %c0_4 = arith.constant 0 : index
    %2 = vector.load %arg4[%c0_3, %c0_4] : memref<32x32xf32, #tpu.memory_space<vmem>>, vector<32x32xf32>
    %c0_5 = arith.constant 0 : index
    %c0_6 = arith.constant 0 : index
    %3 = vector.load %arg5[%c0_5, %c0_6] : memref<6x8xbf16, #tpu.memory_space<vmem>>, vector<6x8xbf16>
    %c0_7 = arith.constant 0 : index
    %c0_8 = arith.constant 0 : index
    %4 = vector.load %arg6[%c0_7, %c0_8] : memref<32x96xbf16, #tpu.memory_space<vmem>>, vector<32x96xbf16>
    %c0_9 = arith.constant 0 : index
    %c0_10 = arith.constant 0 : index
    %5 = vector.load %arg7[%c0_9, %c0_10] : memref<1x96xf32, #tpu.memory_space<vmem>>, vector<1x96xf32>
    %c0_11 = arith.constant 0 : index
    %c0_12 = arith.constant 0 : index
    %6 = vector.load %arg8[%c0_11, %c0_12] : memref<32x32xbf16, #tpu.memory_space<vmem>>, vector<32x32xbf16>
    %c0_13 = arith.constant 0 : index
    %c0_14 = arith.constant 0 : index
    %7 = vector.load %arg9[%c0_13, %c0_14] : memref<1x32xf32, #tpu.memory_space<vmem>>, vector<1x32xf32>
    %c0_15 = arith.constant 0 : index
    %c0_16 = arith.constant 0 : index
    %8 = vector.load %arg10[%c0_15, %c0_16] : memref<32x64xbf16, #tpu.memory_space<vmem>>, vector<32x64xbf16>
    %c0_17 = arith.constant 0 : index
    %c0_18 = arith.constant 0 : index
    %9 = vector.load %arg11[%c0_17, %c0_18] : memref<1x64xf32, #tpu.memory_space<vmem>>, vector<1x64xf32>
    %c0_19 = arith.constant 0 : index
    %c0_20 = arith.constant 0 : index
    %10 = vector.load %arg12[%c0_19, %c0_20] : memref<64x32xbf16, #tpu.memory_space<vmem>>, vector<64x32xbf16>
    %c0_21 = arith.constant 0 : index
    %c0_22 = arith.constant 0 : index
    %11 = vector.load %arg13[%c0_21, %c0_22] : memref<1x32xf32, #tpu.memory_space<vmem>>, vector<1x32xf32>
    %c0_23 = arith.constant 0 : index
    %c0_24 = arith.constant 0 : index
    %12 = vector.load %arg14[%c0_23, %c0_24] : memref<32x96xbf16, #tpu.memory_space<vmem>>, vector<32x96xbf16>
    %c0_25 = arith.constant 0 : index
    %c0_26 = arith.constant 0 : index
    %13 = vector.load %arg15[%c0_25, %c0_26] : memref<1x96xf32, #tpu.memory_space<vmem>>, vector<1x96xf32>
    %c0_27 = arith.constant 0 : index
    %c0_28 = arith.constant 0 : index
    %14 = vector.load %arg16[%c0_27, %c0_28] : memref<32x32xbf16, #tpu.memory_space<vmem>>, vector<32x32xbf16>
    %c0_29 = arith.constant 0 : index
    %c0_30 = arith.constant 0 : index
    %15 = vector.load %arg17[%c0_29, %c0_30] : memref<1x32xf32, #tpu.memory_space<vmem>>, vector<1x32xf32>
    %c0_31 = arith.constant 0 : index
    %c0_32 = arith.constant 0 : index
    %16 = vector.load %arg18[%c0_31, %c0_32] : memref<32x64xbf16, #tpu.memory_space<vmem>>, vector<32x64xbf16>
    %c0_33 = arith.constant 0 : index
    %c0_34 = arith.constant 0 : index
    %17 = vector.load %arg19[%c0_33, %c0_34] : memref<1x64xf32, #tpu.memory_space<vmem>>, vector<1x64xf32>
    %c0_35 = arith.constant 0 : index
    %c0_36 = arith.constant 0 : index
    %18 = vector.load %arg20[%c0_35, %c0_36] : memref<64x32xbf16, #tpu.memory_space<vmem>>, vector<64x32xbf16>
    %c0_37 = arith.constant 0 : index
    %c0_38 = arith.constant 0 : index
    %19 = vector.load %arg21[%c0_37, %c0_38] : memref<1x32xf32, #tpu.memory_space<vmem>>, vector<1x32xf32>
    %c0_39 = arith.constant 0 : index
    %c0_40 = arith.constant 0 : index
    %20 = vector.load %arg22[%c0_39, %c0_40] : memref<32x128xbf16, #tpu.memory_space<vmem>>, vector<32x128xbf16>
    %c0_41 = arith.constant 0 : index
    %c0_42 = arith.constant 0 : index
    %21 = vector.load %arg23[%c0_41, %c0_42] : memref<1x128xf32, #tpu.memory_space<vmem>>, vector<1x128xf32>
    %c0_43 = arith.constant 0 : index
    %c0_44 = arith.constant 0 : index
    %c0_45 = arith.constant 0 : index
    %22 = vector.load %arg1[%c0_43, %c0_44, %c0_45] : memref<1x8x16xf32, #tpu.memory_space<vmem>>, vector<1x8x16xf32>
    %23 = vector.shape_cast %22 : vector<1x8x16xf32> to vector<8x16xf32>
    %24 = arith.truncf %23 : vector<8x16xf32> to vector<8x16xbf16>
    %cst = arith.constant dense<0.000000e+00> : vector<8x32xf32>
    %25 = tpu.matmul %24, %0, %cst {dimension_numbers = #tpu.dot_dimension_numbers<[1], [0], [0], [1], [0, 0, 1, 1], [], []>} : vector<8x16xbf16>, vector<16x32xbf16>, vector<8x32xf32> -> vector<8x32xf32>
    %26 = vector.broadcast %1 : vector<1x32xf32> to vector<8x32xf32>
    %27 = arith.addf %25, %26 : vector<8x32xf32>
    %cst_46 = arith.constant dense<0.000000e+00> : vector<8xf32>
    %28 = vector.multi_reduction <add>, %27, %cst_46 [1] : vector<8x32xf32> to vector<8xf32>
    %29 = vector.shape_cast %28 : vector<8xf32> to vector<8x1xf32>
    %cst_47 = arith.constant 3.200000e+01 : f32
    %30 = vector.broadcast %cst_47 : f32 to vector<8x1xf32>
    %31 = arith.divf %29, %30 : vector<8x1xf32>
    %32 = vector.broadcast %31 : vector<8x1xf32> to vector<8x32xf32>
    %33 = arith.subf %27, %32 : vector<8x32xf32>
    %34 = arith.mulf %33, %33 : vector<8x32xf32>
    %cst_48 = arith.constant dense<0.000000e+00> : vector<8xf32>
    %35 = vector.multi_reduction <add>, %34, %cst_48 [1] : vector<8x32xf32> to vector<8xf32>
    %36 = vector.shape_cast %35 : vector<8xf32> to vector<8x1xf32>
    %cst_49 = arith.constant 3.200000e+01 : f32
    %37 = vector.broadcast %cst_49 : f32 to vector<8x1xf32>
    %38 = arith.divf %36, %37 : vector<8x1xf32>
    %39 = vector.broadcast %31 : vector<8x1xf32> to vector<8x32xf32>
    %40 = arith.subf %27, %39 : vector<8x32xf32>
    %cst_50 = arith.constant 9.99999974E-6 : f32
    %41 = vector.broadcast %cst_50 : f32 to vector<8x1xf32>
    %42 = arith.addf %38, %41 : vector<8x1xf32>
    %43 = math.rsqrt %42 : vector<8x1xf32>
    %44 = vector.broadcast %43 : vector<8x1xf32> to vector<8x32xf32>
    %45 = arith.mulf %40, %44 : vector<8x32xf32>
    %46 = arith.truncf %45 : vector<8x32xf32> to vector<8x32xbf16>
    %cst_51 = arith.constant dense<0.000000e+00> : vector<8x96xf32>
    %47 = tpu.matmul %46, %4, %cst_51 {dimension_numbers = #tpu.dot_dimension_numbers<[1], [0], [0], [1], [0, 0, 1, 1], [], []>} : vector<8x32xbf16>, vector<32x96xbf16>, vector<8x96xf32> -> vector<8x96xf32>
    %48 = vector.broadcast %5 : vector<1x96xf32> to vector<8x96xf32>
    %49 = arith.addf %47, %48 : vector<8x96xf32>
    %50 = vector.extract_strided_slice %49 {offsets = [0, 0], sizes = [8, 32], strides = [1, 1]} : vector<8x96xf32> to vector<8x32xf32>
    %cst_52 = arith.constant 0.000000e+00 : f32
    %51 = vector.broadcast %cst_52 : f32 to vector<8x32xf32>
    %52 = arith.maximumf %50, %51 : vector<8x32xf32>
    %cst_53 = arith.constant 1.000000e-03 : f32
    %53 = vector.broadcast %cst_53 : f32 to vector<8x32xf32>
    %54 = arith.addf %52, %53 : vector<8x32xf32>
    %55 = vector.extract_strided_slice %49 {offsets = [0, 32], sizes = [8, 32], strides = [1, 1]} : vector<8x96xf32> to vector<8x32xf32>
    %cst_54 = arith.constant 0.000000e+00 : f32
    %56 = vector.broadcast %cst_54 : f32 to vector<8x32xf32>
    %57 = arith.maximumf %55, %56 : vector<8x32xf32>
    %cst_55 = arith.constant 1.000000e-03 : f32
    %58 = vector.broadcast %cst_55 : f32 to vector<8x32xf32>
    %59 = arith.addf %57, %58 : vector<8x32xf32>
    %60 = vector.extract_strided_slice %49 {offsets = [0, 64], sizes = [8, 32], strides = [1, 1]} : vector<8x96xf32> to vector<8x32xf32>
    %61 = arith.truncf %59 : vector<8x32xf32> to vector<8x32xbf16>
    %62 = arith.truncf %60 : vector<8x32xf32> to vector<8x32xbf16>
    %cst_56 = arith.constant dense<0.000000e+00> : vector<32x32xf32>
    %63 = tpu.matmul %61, %62, %cst_56 {dimension_numbers = #tpu.dot_dimension_numbers<[0], [0], [1], [1], [0, 1, 1, 1], [], []>} : vector<8x32xbf16>, vector<8x32xbf16>, vector<32x32xf32> -> vector<32x32xf32>
    %cst_57 = arith.constant dense<0.000000e+00> : vector<32xf32>
    %64 = vector.multi_reduction <add>, %59, %cst_57 [0] : vector<8x32xf32> to vector<32xf32>
    %65 = vector.shape_cast %64 : vector<32xf32> to vector<1x32xf32>
    %66 = arith.mulf %63, %2 : vector<32x32xf32>
    %67 = arith.truncf %54 : vector<8x32xf32> to vector<8x32xbf16>
    %68 = arith.truncf %66 : vector<32x32xf32> to vector<32x32xbf16>
    %cst_58 = arith.constant dense<0.000000e+00> : vector<8x32xf32>
    %69 = tpu.matmul %67, %68, %cst_58 {dimension_numbers = #tpu.dot_dimension_numbers<[1], [0], [0], [1], [0, 0, 1, 1], [], []>} : vector<8x32xbf16>, vector<32x32xbf16>, vector<8x32xf32> -> vector<8x32xf32>
    %70 = vector.broadcast %65 : vector<1x32xf32> to vector<8x32xf32>
    %71 = arith.mulf %54, %70 : vector<8x32xf32>
    %72 = arith.truncf %71 : vector<8x32xf32> to vector<8x32xbf16>
    %73 = arith.truncf %2 : vector<32x32xf32> to vector<32x32xbf16>
    %cst_59 = arith.constant dense<0.000000e+00> : vector<8x32xf32>
    %74 = tpu.matmul %72, %73, %cst_59 {dimension_numbers = #tpu.dot_dimension_numbers<[1], [0], [0], [1], [0, 0, 1, 1], [], []>} : vector<8x32xbf16>, vector<32x32xbf16>, vector<8x32xf32> -> vector<8x32xf32>
    %75 = tpu.reciprocal %74 {approx = true} : vector<8x32xf32> -> vector<8x32xf32>
    %76 = arith.mulf %69, %75 : vector<8x32xf32>
    %77 = arith.truncf %76 : vector<8x32xf32> to vector<8x32xbf16>
    %cst_60 = arith.constant dense<0.000000e+00> : vector<8x32xf32>
    %78 = tpu.matmul %77, %6, %cst_60 {dimension_numbers = #tpu.dot_dimension_numbers<[1], [0], [0], [1], [0, 0, 1, 1], [], []>} : vector<8x32xbf16>, vector<32x32xbf16>, vector<8x32xf32> -> vector<8x32xf32>
    %79 = vector.broadcast %7 : vector<1x32xf32> to vector<8x32xf32>
    %80 = arith.addf %78, %79 : vector<8x32xf32>
    %cst_61 = arith.constant dense<0.000000e+00> : vector<8xf32>
    %81 = vector.multi_reduction <add>, %80, %cst_61 [1] : vector<8x32xf32> to vector<8xf32>
    %82 = vector.shape_cast %81 : vector<8xf32> to vector<8x1xf32>
    %cst_62 = arith.constant 3.200000e+01 : f32
    %83 = vector.broadcast %cst_62 : f32 to vector<8x1xf32>
    %84 = arith.divf %82, %83 : vector<8x1xf32>
    %85 = vector.broadcast %84 : vector<8x1xf32> to vector<8x32xf32>
    %86 = arith.subf %80, %85 : vector<8x32xf32>
    %87 = arith.mulf %86, %86 : vector<8x32xf32>
    %cst_63 = arith.constant dense<0.000000e+00> : vector<8xf32>
    %88 = vector.multi_reduction <add>, %87, %cst_63 [1] : vector<8x32xf32> to vector<8xf32>
    %89 = vector.shape_cast %88 : vector<8xf32> to vector<8x1xf32>
    %cst_64 = arith.constant 3.200000e+01 : f32
    %90 = vector.broadcast %cst_64 : f32 to vector<8x1xf32>
    %91 = arith.divf %89, %90 : vector<8x1xf32>
    %92 = vector.broadcast %84 : vector<8x1xf32> to vector<8x32xf32>
    %93 = arith.subf %80, %92 : vector<8x32xf32>
    %cst_65 = arith.constant 9.99999974E-6 : f32
    %94 = vector.broadcast %cst_65 : f32 to vector<8x1xf32>
    %95 = arith.addf %91, %94 : vector<8x1xf32>
    %96 = math.rsqrt %95 : vector<8x1xf32>
    %97 = vector.broadcast %96 : vector<8x1xf32> to vector<8x32xf32>
    %98 = arith.mulf %93, %97 : vector<8x32xf32>
    %99 = arith.truncf %98 : vector<8x32xf32> to vector<8x32xbf16>
    %cst_66 = arith.constant dense<0.000000e+00> : vector<8x64xf32>
    %100 = tpu.matmul %99, %8, %cst_66 {dimension_numbers = #tpu.dot_dimension_numbers<[1], [0], [0], [1], [0, 0, 1, 1], [], []>} : vector<8x32xbf16>, vector<32x64xbf16>, vector<8x64xf32> -> vector<8x64xf32>
    %101 = vector.broadcast %9 : vector<1x64xf32> to vector<8x64xf32>
    %102 = arith.addf %100, %101 : vector<8x64xf32>
    %103 = arith.mulf %102, %102 : vector<8x64xf32>
    %104 = arith.mulf %102, %103 : vector<8x64xf32>
    %cst_67 = arith.constant 4.471500e-02 : f32
    %105 = vector.broadcast %cst_67 : f32 to vector<8x64xf32>
    %106 = arith.mulf %105, %104 : vector<8x64xf32>
    %107 = arith.addf %102, %106 : vector<8x64xf32>
    %cst_68 = arith.constant 0.797884583 : f32
    %108 = vector.broadcast %cst_68 : f32 to vector<8x64xf32>
    %109 = arith.mulf %108, %107 : vector<8x64xf32>
    %110 = math.tanh %109 : vector<8x64xf32>
    %cst_69 = arith.constant 1.000000e+00 : f32
    %111 = vector.broadcast %cst_69 : f32 to vector<8x64xf32>
    %112 = arith.addf %111, %110 : vector<8x64xf32>
    %cst_70 = arith.constant 5.000000e-01 : f32
    %113 = vector.broadcast %cst_70 : f32 to vector<8x64xf32>
    %114 = arith.mulf %113, %112 : vector<8x64xf32>
    %115 = arith.mulf %102, %114 : vector<8x64xf32>
    %116 = arith.truncf %115 : vector<8x64xf32> to vector<8x64xbf16>
    %cst_71 = arith.constant dense<0.000000e+00> : vector<8x32xf32>
    %117 = tpu.matmul %116, %10, %cst_71 {dimension_numbers = #tpu.dot_dimension_numbers<[1], [0], [0], [1], [0, 0, 1, 1], [], []>} : vector<8x64xbf16>, vector<64x32xbf16>, vector<8x32xf32> -> vector<8x32xf32>
    %118 = arith.addf %80, %117 : vector<8x32xf32>
    %119 = vector.broadcast %11 : vector<1x32xf32> to vector<8x32xf32>
    %120 = arith.addf %118, %119 : vector<8x32xf32>
    %cst_72 = arith.constant dense<0.000000e+00> : vector<8xf32>
    %121 = vector.multi_reduction <add>, %120, %cst_72 [1] : vector<8x32xf32> to vector<8xf32>
    %122 = vector.shape_cast %121 : vector<8xf32> to vector<8x1xf32>
    %cst_73 = arith.constant 3.200000e+01 : f32
    %123 = vector.broadcast %cst_73 : f32 to vector<8x1xf32>
    %124 = arith.divf %122, %123 : vector<8x1xf32>
    %125 = vector.broadcast %124 : vector<8x1xf32> to vector<8x32xf32>
    %126 = arith.subf %120, %125 : vector<8x32xf32>
    %127 = arith.mulf %126, %126 : vector<8x32xf32>
    %cst_74 = arith.constant dense<0.000000e+00> : vector<8xf32>
    %128 = vector.multi_reduction <add>, %127, %cst_74 [1] : vector<8x32xf32> to vector<8xf32>
    %129 = vector.shape_cast %128 : vector<8xf32> to vector<8x1xf32>
    %cst_75 = arith.constant 3.200000e+01 : f32
    %130 = vector.broadcast %cst_75 : f32 to vector<8x1xf32>
    %131 = arith.divf %129, %130 : vector<8x1xf32>
    %132 = vector.broadcast %124 : vector<8x1xf32> to vector<8x32xf32>
    %133 = arith.subf %120, %132 : vector<8x32xf32>
    %cst_76 = arith.constant 9.99999974E-6 : f32
    %134 = vector.broadcast %cst_76 : f32 to vector<8x1xf32>
    %135 = arith.addf %131, %134 : vector<8x1xf32>
    %136 = math.rsqrt %135 : vector<8x1xf32>
    %137 = vector.broadcast %136 : vector<8x1xf32> to vector<8x32xf32>
    %138 = arith.mulf %133, %137 : vector<8x32xf32>
    %139 = arith.truncf %138 : vector<8x32xf32> to vector<8x32xbf16>
    %cst_77 = arith.constant dense<0.000000e+00> : vector<8x96xf32>
    %140 = tpu.matmul %139, %12, %cst_77 {dimension_numbers = #tpu.dot_dimension_numbers<[1], [0], [0], [1], [0, 0, 1, 1], [], []>} : vector<8x32xbf16>, vector<32x96xbf16>, vector<8x96xf32> -> vector<8x96xf32>
    %141 = vector.broadcast %13 : vector<1x96xf32> to vector<8x96xf32>
    %142 = arith.addf %140, %141 : vector<8x96xf32>
    %143 = vector.extract_strided_slice %142 {offsets = [0, 0], sizes = [8, 32], strides = [1, 1]} : vector<8x96xf32> to vector<8x32xf32>
    %cst_78 = arith.constant 0.000000e+00 : f32
    %144 = vector.broadcast %cst_78 : f32 to vector<8x32xf32>
    %145 = arith.maximumf %143, %144 : vector<8x32xf32>
    %cst_79 = arith.constant 1.000000e-03 : f32
    %146 = vector.broadcast %cst_79 : f32 to vector<8x32xf32>
    %147 = arith.addf %145, %146 : vector<8x32xf32>
    %148 = vector.extract_strided_slice %142 {offsets = [0, 32], sizes = [8, 32], strides = [1, 1]} : vector<8x96xf32> to vector<8x32xf32>
    %cst_80 = arith.constant 0.000000e+00 : f32
    %149 = vector.broadcast %cst_80 : f32 to vector<8x32xf32>
    %150 = arith.maximumf %148, %149 : vector<8x32xf32>
    %cst_81 = arith.constant 1.000000e-03 : f32
    %151 = vector.broadcast %cst_81 : f32 to vector<8x32xf32>
    %152 = arith.addf %150, %151 : vector<8x32xf32>
    %153 = vector.extract_strided_slice %142 {offsets = [0, 64], sizes = [8, 32], strides = [1, 1]} : vector<8x96xf32> to vector<8x32xf32>
    %154 = arith.truncf %152 : vector<8x32xf32> to vector<8x32xbf16>
    %155 = arith.truncf %153 : vector<8x32xf32> to vector<8x32xbf16>
    %cst_82 = arith.constant dense<0.000000e+00> : vector<32x32xf32>
    %156 = tpu.matmul %154, %155, %cst_82 {dimension_numbers = #tpu.dot_dimension_numbers<[0], [0], [1], [1], [0, 1, 1, 1], [], []>} : vector<8x32xbf16>, vector<8x32xbf16>, vector<32x32xf32> -> vector<32x32xf32>
    %cst_83 = arith.constant dense<0.000000e+00> : vector<32xf32>
    %157 = vector.multi_reduction <add>, %152, %cst_83 [0] : vector<8x32xf32> to vector<32xf32>
    %158 = vector.shape_cast %157 : vector<32xf32> to vector<1x32xf32>
    %159 = arith.mulf %156, %2 : vector<32x32xf32>
    %160 = arith.truncf %147 : vector<8x32xf32> to vector<8x32xbf16>
    %161 = arith.truncf %159 : vector<32x32xf32> to vector<32x32xbf16>
    %cst_84 = arith.constant dense<0.000000e+00> : vector<8x32xf32>
    %162 = tpu.matmul %160, %161, %cst_84 {dimension_numbers = #tpu.dot_dimension_numbers<[1], [0], [0], [1], [0, 0, 1, 1], [], []>} : vector<8x32xbf16>, vector<32x32xbf16>, vector<8x32xf32> -> vector<8x32xf32>
    %163 = vector.broadcast %158 : vector<1x32xf32> to vector<8x32xf32>
    %164 = arith.mulf %147, %163 : vector<8x32xf32>
    %165 = arith.truncf %164 : vector<8x32xf32> to vector<8x32xbf16>
    %166 = arith.truncf %2 : vector<32x32xf32> to vector<32x32xbf16>
    %cst_85 = arith.constant dense<0.000000e+00> : vector<8x32xf32>
    %167 = tpu.matmul %165, %166, %cst_85 {dimension_numbers = #tpu.dot_dimension_numbers<[1], [0], [0], [1], [0, 0, 1, 1], [], []>} : vector<8x32xbf16>, vector<32x32xbf16>, vector<8x32xf32> -> vector<8x32xf32>
    %168 = tpu.reciprocal %167 {approx = true} : vector<8x32xf32> -> vector<8x32xf32>
    %169 = arith.mulf %162, %168 : vector<8x32xf32>
    %170 = arith.truncf %169 : vector<8x32xf32> to vector<8x32xbf16>
    %cst_86 = arith.constant dense<0.000000e+00> : vector<6x32xf32>
    %171 = tpu.matmul %3, %170, %cst_86 {dimension_numbers = #tpu.dot_dimension_numbers<[1], [0], [0], [1], [0, 0, 1, 1], [], []>} : vector<6x8xbf16>, vector<8x32xbf16>, vector<6x32xf32> -> vector<6x32xf32>
    %172 = arith.truncf %171 : vector<6x32xf32> to vector<6x32xbf16>
    %cst_87 = arith.constant dense<0.000000e+00> : vector<6x32xf32>
    %173 = tpu.matmul %172, %14, %cst_87 {dimension_numbers = #tpu.dot_dimension_numbers<[1], [0], [0], [1], [0, 0, 1, 1], [], []>} : vector<6x32xbf16>, vector<32x32xbf16>, vector<6x32xf32> -> vector<6x32xf32>
    %174 = vector.broadcast %15 : vector<1x32xf32> to vector<6x32xf32>
    %175 = arith.addf %173, %174 : vector<6x32xf32>
    %cst_88 = arith.constant dense<0.000000e+00> : vector<6xf32>
    %176 = vector.multi_reduction <add>, %175, %cst_88 [1] : vector<6x32xf32> to vector<6xf32>
    %177 = vector.shape_cast %176 : vector<6xf32> to vector<6x1xf32>
    %cst_89 = arith.constant 3.200000e+01 : f32
    %178 = vector.broadcast %cst_89 : f32 to vector<6x1xf32>
    %179 = arith.divf %177, %178 : vector<6x1xf32>
    %180 = vector.broadcast %179 : vector<6x1xf32> to vector<6x32xf32>
    %181 = arith.subf %175, %180 : vector<6x32xf32>
    %182 = arith.mulf %181, %181 : vector<6x32xf32>
    %cst_90 = arith.constant dense<0.000000e+00> : vector<6xf32>
    %183 = vector.multi_reduction <add>, %182, %cst_90 [1] : vector<6x32xf32> to vector<6xf32>
    %184 = vector.shape_cast %183 : vector<6xf32> to vector<6x1xf32>
    %cst_91 = arith.constant 3.200000e+01 : f32
    %185 = vector.broadcast %cst_91 : f32 to vector<6x1xf32>
    %186 = arith.divf %184, %185 : vector<6x1xf32>
    %187 = vector.broadcast %179 : vector<6x1xf32> to vector<6x32xf32>
    %188 = arith.subf %175, %187 : vector<6x32xf32>
    %cst_92 = arith.constant 9.99999974E-6 : f32
    %189 = vector.broadcast %cst_92 : f32 to vector<6x1xf32>
    %190 = arith.addf %186, %189 : vector<6x1xf32>
    %191 = math.rsqrt %190 : vector<6x1xf32>
    %192 = vector.broadcast %191 : vector<6x1xf32> to vector<6x32xf32>
    %193 = arith.mulf %188, %192 : vector<6x32xf32>
    %194 = arith.truncf %193 : vector<6x32xf32> to vector<6x32xbf16>
    %cst_93 = arith.constant dense<0.000000e+00> : vector<6x64xf32>
    %195 = tpu.matmul %194, %16, %cst_93 {dimension_numbers = #tpu.dot_dimension_numbers<[1], [0], [0], [1], [0, 0, 1, 1], [], []>} : vector<6x32xbf16>, vector<32x64xbf16>, vector<6x64xf32> -> vector<6x64xf32>
    %196 = vector.broadcast %17 : vector<1x64xf32> to vector<6x64xf32>
    %197 = arith.addf %195, %196 : vector<6x64xf32>
    %198 = arith.mulf %197, %197 : vector<6x64xf32>
    %199 = arith.mulf %197, %198 : vector<6x64xf32>
    %cst_94 = arith.constant 4.471500e-02 : f32
    %200 = vector.broadcast %cst_94 : f32 to vector<6x64xf32>
    %201 = arith.mulf %200, %199 : vector<6x64xf32>
    %202 = arith.addf %197, %201 : vector<6x64xf32>
    %cst_95 = arith.constant 0.797884583 : f32
    %203 = vector.broadcast %cst_95 : f32 to vector<6x64xf32>
    %204 = arith.mulf %203, %202 : vector<6x64xf32>
    %205 = math.tanh %204 : vector<6x64xf32>
    %cst_96 = arith.constant 1.000000e+00 : f32
    %206 = vector.broadcast %cst_96 : f32 to vector<6x64xf32>
    %207 = arith.addf %206, %205 : vector<6x64xf32>
    %cst_97 = arith.constant 5.000000e-01 : f32
    %208 = vector.broadcast %cst_97 : f32 to vector<6x64xf32>
    %209 = arith.mulf %208, %207 : vector<6x64xf32>
    %210 = arith.mulf %197, %209 : vector<6x64xf32>
    %211 = arith.truncf %210 : vector<6x64xf32> to vector<6x64xbf16>
    %cst_98 = arith.constant dense<0.000000e+00> : vector<6x32xf32>
    %212 = tpu.matmul %211, %18, %cst_98 {dimension_numbers = #tpu.dot_dimension_numbers<[1], [0], [0], [1], [0, 0, 1, 1], [], []>} : vector<6x64xbf16>, vector<64x32xbf16>, vector<6x32xf32> -> vector<6x32xf32>
    %213 = arith.addf %175, %212 : vector<6x32xf32>
    %214 = vector.broadcast %19 : vector<1x32xf32> to vector<6x32xf32>
    %215 = arith.addf %213, %214 : vector<6x32xf32>
    %cst_99 = arith.constant dense<0.000000e+00> : vector<6xf32>
    %216 = vector.multi_reduction <add>, %215, %cst_99 [1] : vector<6x32xf32> to vector<6xf32>
    %217 = vector.shape_cast %216 : vector<6xf32> to vector<6x1xf32>
    %cst_100 = arith.constant 3.200000e+01 : f32
    %218 = vector.broadcast %cst_100 : f32 to vector<6x1xf32>
    %219 = arith.divf %217, %218 : vector<6x1xf32>
    %220 = vector.broadcast %219 : vector<6x1xf32> to vector<6x32xf32>
    %221 = arith.subf %215, %220 : vector<6x32xf32>
    %222 = arith.mulf %221, %221 : vector<6x32xf32>
    %cst_101 = arith.constant dense<0.000000e+00> : vector<6xf32>
    %223 = vector.multi_reduction <add>, %222, %cst_101 [1] : vector<6x32xf32> to vector<6xf32>
    %224 = vector.shape_cast %223 : vector<6xf32> to vector<6x1xf32>
    %cst_102 = arith.constant 3.200000e+01 : f32
    %225 = vector.broadcast %cst_102 : f32 to vector<6x1xf32>
    %226 = arith.divf %224, %225 : vector<6x1xf32>
    %227 = vector.broadcast %219 : vector<6x1xf32> to vector<6x32xf32>
    %228 = arith.subf %215, %227 : vector<6x32xf32>
    %cst_103 = arith.constant 9.99999974E-6 : f32
    %229 = vector.broadcast %cst_103 : f32 to vector<6x1xf32>
    %230 = arith.addf %226, %229 : vector<6x1xf32>
    %231 = math.rsqrt %230 : vector<6x1xf32>
    %232 = vector.broadcast %231 : vector<6x1xf32> to vector<6x32xf32>
    %233 = arith.mulf %228, %232 : vector<6x32xf32>
    %234 = arith.truncf %233 : vector<6x32xf32> to vector<6x32xbf16>
    %cst_104 = arith.constant dense<0.000000e+00> : vector<6x128xf32>
    %235 = tpu.matmul %234, %20, %cst_104 {dimension_numbers = #tpu.dot_dimension_numbers<[1], [0], [0], [1], [0, 0, 1, 1], [], []>} : vector<6x32xbf16>, vector<32x128xbf16>, vector<6x128xf32> -> vector<6x128xf32>
    %236 = vector.broadcast %21 : vector<1x128xf32> to vector<6x128xf32>
    %237 = arith.addf %235, %236 : vector<6x128xf32>
    %c0_105 = arith.constant 0 : index
    %c0_106 = arith.constant 0 : index
    %c0_107 = arith.constant 0 : index
    %238 = vector.load %arg24[%c0_105, %c0_106, %c0_107] : memref<1x6x128xf32, #tpu.memory_space<vmem>>, vector<1x6x128xf32>
    %239 = vector.shape_cast %238 : vector<1x6x128xf32> to vector<6x128xf32>
    %240 = vector.shape_cast %237 : vector<6x128xf32> to vector<1x6x128xf32>
    tpu.vector_store %arg24[%c0_105, %c0_106, %c0_107], %240 {strides = array<i32>} : memref<1x6x128xf32, #tpu.memory_space<vmem>>, vector<1x6x128xf32>,
    return
  }
  func.func @transform_0(%arg0: i32) -> (i32, i32, i32) {
    %c0_i32 = arith.constant 0 : i32
    %c0_i32_0 = arith.constant 0 : i32
    %c0_i32_1 = arith.constant 0 : i32
    return %arg0, %c0_i32, %c0_i32_0 : i32, i32, i32
  }
  func.func @transform_1(%arg0: i32) -> (i32, i32) {
    %c0_i32 = arith.constant 0 : i32
    %c0_i32_0 = arith.constant 0 : i32
    %c0_i32_1 = arith.constant 0 : i32
    return %c0_i32, %c0_i32_0 : i32, i32
  }
  func.func @transform_2(%arg0: i32) -> (i32, i32) {
    %c0_i32 = arith.constant 0 : i32
    %c0_i32_0 = arith.constant 0 : i32
    %c0_i32_1 = arith.constant 0 : i32
    return %c0_i32, %c0_i32_0 : i32, i32
  }
  func.func @transform_3(%arg0: i32) -> (i32, i32) {
    %c0_i32 = arith.constant 0 : i32
    %c0_i32_0 = arith.constant 0 : i32
    %c0_i32_1 = arith.constant 0 : i32
    return %c0_i32, %c0_i32_0 : i32, i32
  }
  func.func @transform_4(%arg0: i32) -> (i32, i32) {
    %c0_i32 = arith.constant 0 : i32
    %c0_i32_0 = arith.constant 0 : i32
    %c0_i32_1 = arith.constant 0 : i32
    return %c0_i32, %c0_i32_0 : i32, i32
  }
  func.func @transform_5(%arg0: i32) -> (i32, i32) {
    %c0_i32 = arith.constant 0 : i32
    %c0_i32_0 = arith.constant 0 : i32
    %c0_i32_1 = arith.constant 0 : i32
    return %c0_i32, %c0_i32_0 : i32, i32
  }
  func.func @transform_6(%arg0: i32) -> (i32, i32) {
    %c0_i32 = arith.constant 0 : i32
    %c0_i32_0 = arith.constant 0 : i32
    %c0_i32_1 = arith.constant 0 : i32
    return %c0_i32, %c0_i32_0 : i32, i32
  }
  func.func @transform_7(%arg0: i32) -> (i32, i32) {
    %c0_i32 = arith.constant 0 : i32
    %c0_i32_0 = arith.constant 0 : i32
    %c0_i32_1 = arith.constant 0 : i32
    return %c0_i32, %c0_i32_0 : i32, i32
  }
  func.func @transform_8(%arg0: i32) -> (i32, i32) {
    %c0_i32 = arith.constant 0 : i32
    %c0_i32_0 = arith.constant 0 : i32
    %c0_i32_1 = arith.constant 0 : i32
    return %c0_i32, %c0_i32_0 : i32, i32
  }
  func.func @transform_9(%arg0: i32) -> (i32, i32) {
    %c0_i32 = arith.constant 0 : i32
    %c0_i32_0 = arith.constant 0 : i32
    %c0_i32_1 = arith.constant 0 : i32
    return %c0_i32, %c0_i32_0 : i32, i32
  }
  func.func @transform_10(%arg0: i32) -> (i32, i32) {
    %c0_i32 = arith.constant 0 : i32
    %c0_i32_0 = arith.constant 0 : i32
    %c0_i32_1 = arith.constant 0 : i32
    return %c0_i32, %c0_i32_0 : i32, i32
  }
  func.func @transform_11(%arg0: i32) -> (i32, i32) {
    %c0_i32 = arith.constant 0 : i32
    %c0_i32_0 = arith.constant 0 : i32
    %c0_i32_1 = arith.constant 0 : i32
    return %c0_i32, %c0_i32_0 : i32, i32
  }
  func.func @transform_12(%arg0: i32) -> (i32, i32) {
    %c0_i32 = arith.constant 0 : i32
    %c0_i32_0 = arith.constant 0 : i32
    %c0_i32_1 = arith.constant 0 : i32
    return %c0_i32, %c0_i32_0 : i32, i32
  }
  func.func @transform_13(%arg0: i32) -> (i32, i32) {
    %c0_i32 = arith.constant 0 : i32
    %c0_i32_0 = arith.constant 0 : i32
    %c0_i32_1 = arith.constant 0 : i32
    return %c0_i32, %c0_i32_0 : i32, i32
  }
  func.func @transform_14(%arg0: i32) -> (i32, i32) {
    %c0_i32 = arith.constant 0 : i32
    %c0_i32_0 = arith.constant 0 : i32
    %c0_i32_1 = arith.constant 0 : i32
    return %c0_i32, %c0_i32_0 : i32, i32
  }
  func.func @transform_15(%arg0: i32) -> (i32, i32) {
    %c0_i32 = arith.constant 0 : i32
    %c0_i32_0 = arith.constant 0 : i32
    %c0_i32_1 = arith.constant 0 : i32
    return %c0_i32, %c0_i32_0 : i32, i32
  }
  func.func @transform_16(%arg0: i32) -> (i32, i32) {
    %c0_i32 = arith.constant 0 : i32
    %c0_i32_0 = arith.constant 0 : i32
    %c0_i32_1 = arith.constant 0 : i32
    return %c0_i32, %c0_i32_0 : i32, i32
  }
  func.func @transform_17(%arg0: i32) -> (i32, i32) {
    %c0_i32 = arith.constant 0 : i32
    %c0_i32_0 = arith.constant 0 : i32
    %c0_i32_1 = arith.constant 0 : i32
    return %c0_i32, %c0_i32_0 : i32, i32
  }
  func.func @transform_18(%arg0: i32) -> (i32, i32) {
    %c0_i32 = arith.constant 0 : i32
    %c0_i32_0 = arith.constant 0 : i32
    %c0_i32_1 = arith.constant 0 : i32
    return %c0_i32, %c0_i32_0 : i32, i32
  }
  func.func @transform_19(%arg0: i32) -> (i32, i32) {
    %c0_i32 = arith.constant 0 : i32
    %c0_i32_0 = arith.constant 0 : i32
    %c0_i32_1 = arith.constant 0 : i32
    return %c0_i32, %c0_i32_0 : i32, i32
  }
  func.func @transform_20(%arg0: i32) -> (i32, i32) {
    %c0_i32 = arith.constant 0 : i32
    %c0_i32_0 = arith.constant 0 : i32
    %c0_i32_1 = arith.constant 0 : i32
    return %c0_i32, %c0_i32_0 : i32, i32
  }
  func.func @transform_21(%arg0: i32) -> (i32, i32) {
    %c0_i32 = arith.constant 0 : i32
    %c0_i32_0 = arith.constant 0 : i32
    %c0_i32_1 = arith.constant 0 : i32
    return %c0_i32, %c0_i32_0 : i32, i32
  }
  func.func @transform_22(%arg0: i32) -> (i32, i32) {
    %c0_i32 = arith.constant 0 : i32
    %c0_i32_0 = arith.constant 0 : i32
    %c0_i32_1 = arith.constant 0 : i32
    return %c0_i32, %c0_i32_0 : i32, i32
  }
  func.func @transform_23(%arg0: i32) -> (i32, i32, i32) {
    %c0_i32 = arith.constant 0 : i32
    %c0_i32_0 = arith.constant 0 : i32
    %c0_i32_1 = arith.constant 0 : i32
    return %arg0, %c0_i32, %c0_i32_0 : i32, i32, i32
  }
}

</mosaic_0001>

<bundles_post_ra>
// kernel: tpu_custom_call.1
= control target key start
LH: loop header
LB: loop body
LE: loop exit
PB: predicated region body
PF: predicated region fallthrough
CT: control target
= control target key end

     0   :  { %s3071_s0 = inlined_call_operand.vmem [shape: f32[2,8,16], index: 0, kind: input, shape index: {}]   ;;  %s3072_s1 = inlined_call_operand.hbm [shape: bf16[16,32], index: 1, kind: input, shape index: {}]   ;;  %s3073_s2 = inlined_call_operand.vmem [shape: f32[1,32], index: 2, kind: input, shape index: {}]   ;;  %s3074_s3 = inlined_call_operand.vmem [shape: f32[32,32], index: 3, kind: input, shape index: {}]   ;;  %s3075_s4 = inlined_call_operand.hbm [shape: bf16[6,8], index: 4, kind: input, shape index: {}]   ;;  %s3076_s5 = inlined_call_operand.vmem [shape: bf16[32,96], index: 5, kind: input, shape index: {}]   ;;  %s3077_s6 = inlined_call_operand.hbm [shape: f32[1,96], index: 6, kind: input, shape index: {}]   ;;  %s3078_s7 = inlined_call_operand.vmem [shape: bf16[32,32], index: 7, kind: input, shape index: {}]   ;;  %s3079_s8 = inlined_call_operand.hbm [shape: f32[1,32], index: 8, kind: input, shape index: {}]   ;;  %s3080_s9 = inlined_call_operand.hbm [shape: bf16[32,64], index: 9, kind: input, shape index: {}]   ;;  %s3081_s10 = inlined_call_operand.hbm [shape: f32[1,64], index: 10, kind: input, shape index: {}]   ;;  %s3082_s11 = inlined_call_operand.vmem [shape: bf16[64,32], index: 11, kind: input, shape index: {}]   ;;  %s3083_s12 = inlined_call_operand.hbm [shape: f32[1,32], index: 12, kind: input, shape index: {}]   ;;  %s3084_s13 = inlined_call_operand.hbm [shape: bf16[32,96], index: 13, kind: input, shape index: {}]   ;;  %s3085_s14 = inlined_call_operand.hbm [shape: f32[1,96], index: 14, kind: input, shape index: {}]   ;;  %s3086_s15 = inlined_call_operand.hbm [shape: bf16[32,32], index: 15, kind: input, shape index: {}]   ;;  %s3087_s16 = inlined_call_operand.hbm [shape: f32[1,32], index: 16, kind: input, shape index: {}]   ;;  %s3088_s17 = inlined_call_operand.hbm [shape: bf16[32,64], index: 17, kind: input, shape index: {}]   ;;  %s3089_s18 = inlined_call_operand.hbm [shape: f32[1,64], index: 18, kind: input, shape index: {}]   ;;  %s3090_s19 = inlined_call_operand.vmem [shape: bf16[64,32], index: 19, kind: input, shape index: {}]   ;;  %s3091_s20 = inlined_call_operand.vmem [shape: f32[1,32], index: 20, kind: input, shape index: {}]   ;;  %s3092_s21 = inlined_call_operand.vmem [shape: bf16[32,128], index: 21, kind: input, shape index: {}]   ;;  %s3093_s22 = inlined_call_operand.vmem [shape: f32[1,128], index: 22, kind: input, shape index: {}]   ;;  %s3094_s23 = inlined_call_operand.vmem [shape: f32[2,6,128], index: 23, kind: output, shape index: {}]  }
   0x1   :  { %3099 = sst [smem:[#allocation30_spill]] %s3071_s0 }
   0x2   :  { %3100 = sst [smem:[#allocation31_spill]] %s3072_s1 }
   0x3   :  { %3101 = sst [smem:[#allocation32_spill]] %s3073_s2 }
   0x4   :  { %3102 = sst [smem:[#allocation33_spill]] %s3074_s3 }
   0x5   :  { %3103 = sst [smem:[#allocation34_spill]] %s3075_s4 }
   0x6   :  { %3104 = sst [smem:[#allocation35_spill]] %s3076_s5 }
   0x7   :  { %3105 = sst [smem:[#allocation36_spill]] %s3077_s6 }
   0x8   :  { %3106 = sst [smem:[#allocation37_spill]] %s3078_s7 }
   0x9   :  { %3107 = sst [smem:[#allocation38_spill]] %s3079_s8 }
   0xa   :  { %3108 = sst [smem:[#allocation39_spill]] %s3081_s10 }
   0xb   :  { %3109 = sst [smem:[#allocation40_spill]] %s3084_s13 }
   0xc   :  { %3110 = sst [smem:[#allocation41_spill]] %s3086_s15 }
   0xd   :  { %28 = vsyncpa [#allocation3], 0 }
   0xe   :  { %29 = vsyncpa [#allocation5], 0 }
   0xf   :  { %30 = vsyncpa [#allocation8], 0 }
  0x10   :  { %31 = vsyncpa [#allocation11], 0 }
  0x11   :  { %32 = vsyncpa [#allocation14], 0 }
  0x12   :  { %33 = vsyncpa [#allocation17], 0 }
  0x13   :  { %34 = vsyncpa [#allocation20], 0  ;;  %s2778_s4 = smov 0  }
  0x14 LB: > { %3111 = sst [smem:[#allocation29_spill]] %s2638_s4  ;;  %s2787_s1 = sadd.s32 4294967295, %s2638_s4   ;;  %s2638_s4 = sphi %s2778_s4, %s40_s4  }
  0x15   : > { %s3112_s25 = sld [smem:[#allocation34_spill]]  ;;  %p1872_p0 = scmp.ge.s32.totalorder %s2638_s4, 1 }
  0x16   : > { %p559_p1 = scmp.lt.s32.totalorder %s2638_s4, 3  ;;  %p2131_p2 = scmp.eq.s32.totalorder %s2787_s1, 0 }
  0x17   : > { %s2640_s2 = smov [#allocation4]   ;;  %s3114_s8 = sld [smem:[#allocation38_spill]] }
  0x18   : > { %p2792_p3 = pnand %p1872_p0, %p559_p1  ;;  %s593_s6 = sshll.u32 %s2640_s2, 4  ;;  %s594_s6 = int_to_ptr.vmem [resolvable:$true] %s593_s6 }
  0x19   : > { %s3115_s10 = sld [smem:[#allocation39_spill]]  ;;  %s2641_s24 = smov [#allocation7]  }
  0x1a   : > { %p2091_p4 = pneg %p2792_p3  ;;  %s2642_s2 = smov [#allocation10]  }
  0x1b   : > { %s591_s5 = sshll.u32 %s3112_s25, 4  ;;  %s623_s25 = sshll.u32 %s2641_s24, 4  ;;  %s592_s5 = int_to_ptr.hbm [resolvable:$true] %s591_s5  ;;  %s624_s25 = int_to_ptr.vmem [resolvable:$true] %s623_s25 }
  0x1c   : > { %p2806_p5 = pnand %p2131_p2, %p2091_p4  ;;  %s649_s27 = sshll.u32 %s2642_s2, 4  ;;  %s650_s27 = int_to_ptr.vmem [resolvable:$true] %s649_s27 }
  0x1d   : > { %s621_s28 = sshll.u32 %s3114_s8, 4  ;;  %s3117_s13 = sld [smem:[#allocation40_spill]]  ;;  %s622_s28 = int_to_ptr.hbm [resolvable:$true] %s621_s28 }
  0x1e   : > { %2097 = dma.hbm_to_vmem [thread:$0]  (!%p2806_p5), %s592_s5, 64, %s594_s6, [#allocation5]  }
  0x1f   : > { %s647_s0 = sshll.u32 %s3115_s10, 4  ;;  %s2643_s8 = smov [#allocation13]   ;;  %s648_s0 = int_to_ptr.hbm [resolvable:$true] %s647_s0 }
  0x20   : > { %2103 = dma.hbm_to_vmem [thread:$0]  (!%p2806_p5), %s622_s28, 16, %s624_s25, [#allocation8]  }
  0x21   : > { %2109 = dma.hbm_to_vmem [thread:$0]  (!%p2806_p5), %s648_s0, 16, %s650_s27, [#allocation11]  }
  0x22   : > { %s675_s24 = sshll.u32 %s2643_s8, 4  ;;  %s3118_s15 = sld [smem:[#allocation41_spill]]  ;;  %s676_s24 = int_to_ptr.vmem [resolvable:$true] %s675_s24 }
  0x23   : > { %s673_s3 = sshll.u32 %s3117_s13, 4  ;;  %s2644_s6 = smov 64   ;;  %s674_s3 = int_to_ptr.hbm [resolvable:$true] %s673_s3 }
  0x24   : > { %s2645_s28 = smov 4   ;;  %s2646_s0 = smov [#allocation16]  }
  0x25   : > { %2115 = dma.hbm_to_vmem [thread:$0]  (!%p2806_p5), %s674_s3, 256, %s676_s24, [#allocation14], %s2644_s6, %s2644_s6, %s2645_s28  }
  0x26   : > { %s701_s25 = sshll.u32 %s2646_s0, 4  ;;  %s725_s8 = sshll.u32 %s3088_s17, 4  ;;  %s702_s25 = int_to_ptr.vmem [resolvable:$true] %s701_s25  ;;  %s726_s8 = int_to_ptr.hbm [resolvable:$true] %s725_s8 }
  0x27   : > { %s3119_s7 = sld [smem:[#allocation31_spill]]  ;;  %s2647_s3 = smov [#allocation19]  }
  0x28   : > { %s699_s5 = sshll.u32 %s3118_s15, 4  ;;  %s727_s24 = sshll.u32 %s2647_s3, 4  ;;  %s700_s5 = int_to_ptr.hbm [resolvable:$true] %s699_s5  ;;  %s728_s24 = int_to_ptr.vmem [resolvable:$true] %s727_s24 }
  0x29   : > { %2121 = dma.hbm_to_vmem [thread:$0]  (!%p2806_p5), %s700_s5, 256, %s702_s25, [#allocation17], %s2644_s6, %s2644_s6, %s2645_s28  }
  0x2a   : > { %2127 = dma.hbm_to_vmem [thread:$0]  (!%p2806_p5), %s726_s8, 256, %s728_s24, [#allocation20], %s2644_s6, %s2644_s6, %s2645_s28  }
  0x2b   : > { %s2648_s0 = smov [#allocation2]   ;;  %s3120_s15 = sld [smem:[#allocation36_spill]] }
  0x2c   : > { %s572_s2 = sshll.u32 %s2648_s0, 4  ;;  %s632_s4 = sshll.u32 %s3080_s9, 4  ;;  %s573_s2 = int_to_ptr.vmem [resolvable:$true] %s572_s2  ;;  %s633_s4 = int_to_ptr.hbm [resolvable:$true] %s632_s4 }
  0x2d   : > { %s570_s29 = sshll.u32 %s3119_s7, 4  ;;  %s2649_s7 = smov [#allocation6]   ;;  %s571_s29 = int_to_ptr.hbm [resolvable:$true] %s570_s29 }
  0x2e   : > { %2094 = dma.hbm_to_vmem [thread:$0]  (!%p2806_p5), %s571_s29, 128, %s573_s2, [#allocation3], %s2644_s6, %s2644_s6, %s2645_s28  }
  0x2f   : > { %s608_s8 = sshll.u32 %s2649_s7, 4  ;;  %s2650_s13 = smov [#allocation9]   ;;  %s609_s8 = int_to_ptr.vmem [resolvable:$true] %s608_s8 }
  0x30   : > { %s662_s0 = sshll.u32 %s3083_s12, 4  ;;  %s688_s27 = sshll.u32 %s3085_s14, 4  ;;  %s663_s0 = int_to_ptr.hbm [resolvable:$true] %s662_s0  ;;  %s689_s27 = int_to_ptr.hbm [resolvable:$true] %s688_s27 }
  0x31   : > { %s606_s5 = sshll.u32 %s3120_s15, 4  ;;  %s634_s15 = sshll.u32 %s2650_s13, 4  ;;  %s607_s5 = int_to_ptr.hbm [resolvable:$true] %s606_s5  ;;  %s635_s15 = int_to_ptr.vmem [resolvable:$true] %s634_s15 }
  0x32   : > { %2100 = dma.hbm_to_vmem [thread:$0]  (!%p2806_p5), %s607_s5, 16, %s609_s8, [#allocation5]  }
  0x33   : > { %2106 = dma.hbm_to_vmem [thread:$0]  (!%p2806_p5), %s633_s4, 256, %s635_s15, [#allocation8], %s2644_s6, %s2644_s6, %s2645_s28  }
  0x34   : > { %s2651_s25 = smov [#allocation12]   ;;  %s2652_s10 = smov [#allocation15]  }
  0x35   : > { %s664_s5 = sshll.u32 %s2651_s25, 4  ;;  %s690_s7 = sshll.u32 %s2652_s10, 4  ;;  %s665_s5 = int_to_ptr.vmem [resolvable:$true] %s664_s5  ;;  %s691_s7 = int_to_ptr.vmem [resolvable:$true] %s690_s7 }
  0x36   : > { %2112 = dma.hbm_to_vmem [thread:$0]  (!%p2806_p5), %s663_s0, 16, %s665_s5, [#allocation11]  }
  0x37   : > { %s714_s3 = sshll.u32 %s3087_s16, 4  ;;  %s740_s4 = sshll.u32 %s3089_s18, 4  ;;  %s715_s3 = int_to_ptr.hbm [resolvable:$true] %s714_s3  ;;  %s741_s4 = int_to_ptr.hbm [resolvable:$true] %s740_s4 }
  0x38   : > { %2118 = dma.hbm_to_vmem [thread:$0]  (!%p2806_p5), %s689_s27, 16, %s691_s7, [#allocation14]  }
  0x39   : > { %s2653_s15 = smov [#allocation18]   ;;  %s2654_s0 = smov [#allocation21]  }
  0x3a   : > { %s716_s24 = sshll.u32 %s2653_s15, 4  ;;  %s742_s29 = sshll.u32 %s2654_s0, 4  ;;  %s717_s24 = int_to_ptr.vmem [resolvable:$true] %s716_s24  ;;  %s743_s29 = int_to_ptr.vmem [resolvable:$true] %s742_s29 }
  0x3b   : > { %2124 = dma.hbm_to_vmem [thread:$0]  (!%p2806_p5), %s715_s3, 16, %s717_s24, [#allocation17]  }
  0x3c   : > { %2130 = dma.hbm_to_vmem [thread:$0]  (!%p2806_p5), %s741_s4, 16, %s743_s29, [#allocation20]  }
  0x3d   : > { %774 = sbr.rel (%p2792_p3) target bundleno = 4098 (0x1002), region = 112 }
  0x42   : > { %2609 = dma.done.wait (%p2131_p2), [#allocation3], 128  }
  0x43   : > { %2611 = vsyncadd (%p2131_p2), [#allocation3], 4294967168 }
  0x44   : > { %2613 = dma.done.wait (%p2131_p2), [#allocation5], 80  }
  0x45   : > { %2615 = vsyncadd (%p2131_p2), [#allocation5], 4294967216 }
  0x46   : > { %2617 = dma.done.wait (%p2131_p2), [#allocation8], 272  }
  0x47   : > { %2619 = vsyncadd (%p2131_p2), [#allocation8], 4294967024 }
  0x48   : > { %2621 = dma.done.wait (%p2131_p2), [#allocation11], 32  }
  0x49   : > { %2623 = vsyncadd (%p2131_p2), [#allocation11], 4294967264 }
  0x4a   : > { %2625 = dma.done.wait (%p2131_p2), [#allocation14], 272  }
  0x4b   : > { %2627 = vsyncadd (%p2131_p2), [#allocation14], 4294967024 }
  0x4c   : > { %2629 = dma.done.wait (%p2131_p2), [#allocation17], 272  }
  0x4d   : > { %2631 = vsyncadd (%p2131_p2), [#allocation17], 4294967024 }
  0x4e   : > { %2633 = dma.done.wait (%p2131_p2), [#allocation20], 272  }
  0x4f   : > { %2635 = vsyncadd (%p2131_p2), [#allocation20], 4294967024  ;;  %p897_p6 = scmp.lt.s32.totalorder %s2787_s1, 1  ;;  %s3121_s27 = sld [smem:[#allocation30_spill]]  ;;  %v2016_v0 = vld [vmem:[#allocation2] sm:$0xff]  ;;  %vm978_vm0 = vcmask 130048  }
  0x50   : > { %989 = vmatpush.bf16.msra.mxu0 %v2016_v0  ;;  %s3122_s7 = sld [smem:[#allocation32_spill]]  ;;  %vm995_vm1 = vcmask 261120   ;;  %v2655_v8 = vmov 32.0   ;;  %v2185_v34 = vld [vmem:[#allocation6] ss:$0 sm:$0xff]  ;;  %s2656_s4 = smov 96  }
  0x51   : > { %s3128_s1 = smov (!%p897_p6, %s2787_s1), 1  ;;  %2194 = vrcp.f32 %v2655_v8  ;;  %s3123_s3 = sld [smem:[#allocation35_spill]]  ;;  %vm1091_vm6 = vcmask 1043456   ;;  %vm1114_vm7 = vcmask 523520   ;;  %vm1084_vm8 = vcmask 64512  }
  0x52   : > { %s1901_s26 = sshll.u32 %s3128_s1, 3  ;;  %s2657_s15 = smov 64   ;;  %vm1290_vm12 = vcmask 523264  }
  0x53   : > { %s3124_s29 = sld [smem:[#allocation33_spill]]  ;;  %s904_s6 = scalar_lea.vmem %s3094_s23, %s1901_s26 }
  0x54   : > { %s3125_s13 = sld [smem:[#allocation37_spill]] }
  0x55   : > { %s900_s25 = scalar_lea.vmem %s3121_s27, %s1901_s26 }
  0x56   : > { %v967_v1 = vld [vmem:[%s900_s25] sm:$0xff] }
  0x57   : > { %v968_v2 = vpack.c.bf16 %v967_v1, %v967_v1  ;;  %v2184_v3 = vld [vmem:[%s3122_s7] ss:$0 sm:$0xff]  ;;  %v2195_v9 = vpop.eup %2194  ;;  %v2018_v20 = vld [vmem:[%s3123_s3 + $0x8] sm:$0xff] }
  0x58   : > { %v1000_v10 = vmul.f32 32.0, %v2195_v9  ;;  %vm1004_vm2 = vweird.f32 %v2195_v9  ;;  %1050 = vmatpush.bf16.msra.mxu1 %v2018_v20  ;;  %v2017_v21 = vld [vmem:[%s3123_s3] sm:$0xff] }
  0x59   : > { %1907 = vmatmul.msk.bf16.vlgmr.msra.gmra.mxu0 %vm978_vm0, %v968_v2  ;;  %v2945_v52 = vld [vmem:[%s3124_s29 + $0x10] sm:$0xff]  ;;  %v2950_v53 = vld [vmem:[%s3124_s29 + $0x18] sm:$0xff]  ;;  %v2962_v57 = vld [vmem:[%s3124_s29] sm:$0xff]  ;;  %vm1526_vm0 = vcmask 259072  }
  0x5a   : > { %v1001_v11 = vsub.f32 1.0, %v1000_v10  ;;  %v2954_v54 = vpack.c.bf16 %v2950_v53, %v2945_v52  ;;  %v2967_v58 = vld [vmem:[%s3124_s29 + $0x8] sm:$0xff] }
  0x5b   : > { %v2971_v59 = vpack.c.bf16 %v2967_v58, %v2962_v57 }
  0x5c   : > { %v1002_v12 = vmul.f32 %v2195_v9, %v1001_v11  ;;  %1051 = vmatpush.bf16.msra.mxu1 %v2017_v21  ;;  %1161 = vmatpush.bf16.msrb.mxu0 %v2954_v54 }
  0x5e   : > { %v1003_v13 = vadd.f32 %v2195_v9, %v1002_v12  ;;  %v2019_v12 = vld [vmem:[%s3125_s13] sm:$0xff] }
  0x60   : > { %v2925_v14 = vsel %vm1004_vm2, %v2195_v9, %v1003_v13  ;;  %1162 = vmatpush.bf16.msrb.mxu0 %v2971_v59 }
  0xd6   : > { %v991_v4 = vpop.f32.mrf.mxu0 }
  0xd7   : > { %v992_v5 = vadd.f32 %v2184_v3, %v991_v4  ;;  %v2020_v3 = vld [vmem:[%s3125_s13 + $0x8] sm:$0xff] }
  0xd8   : > { %1195 = vmatpush.bf16.msrb.mxu1 %v2020_v3 }
  0xd9   : > { %v996_v6 = vsel %vm995_vm1, %v992_v5, 0.0 }
  0xda   : > { %997 = vadd.xlane.f32.xlu0 %v996_v6 }
  0xdc   : > { %1196 = vmatpush.bf16.msrb.mxu1 %v2019_v12  ;;  %v2028_v12 = vld [vmem:[#allocation13 + $0x8] sm:$0xff] }
  0xde   : > { %v993_v7 = vpop.f32.mrf.mxu0 }
 0x14d   : > { %v998_v15 = vpop.xlane.xlu0 %997 }
 0x14e   : > { %v1006_v16 = vmul.f32 %v2925_v14, %v998_v15 }
 0x150   : > { %v1007_v17 = vsub.f32 %v992_v5, %v1006_v16 }
 0x152   : > { %v1008_v18 = vmul.f32 %v1007_v17, %v1007_v17 }
 0x154   : > { %v1009_v19 = vsel %vm995_vm1, %v1008_v18, 0.0 }
 0x155   : > { %1010 = vadd.xlane.f32.xlu0 %v1009_v19  ;;  %v2186_v19 = vld [vmem:[#allocation7] ss:$0 sm:$0xff] }
 0x1c8   : > { %v1011_v22 = vpop.xlane.xlu0 %1010 }
 0x1c9   : > { %v1012_v23 = vmul.f32 %v1011_v22, %v2925_v14 }
 0x1cb   : > { %v1013_v24 = vadd.f32 1e-05, %v1012_v23 }
 0x1cd   : > { %2196 = vrsqrt.f32 %v1013_v24  ;;  %vm1020_vm4 = vweird.f32 %v1013_v24 }
 0x1d3   : > { %v2197_v25 = vpop.eup %2196 }
 0x1d4   : > { %v1015_v26 = vmul.f32 %v2197_v25, %v1013_v24  ;;  %vm1021_vm3 = vweird.f32 %v2197_v25 }
 0x1d5   : > { %vm1022_vm5 = vmor %vm1020_vm4, %vm1021_vm3 }
 0x1d6   : > { %v1016_v27 = vmul.f32 %v2197_v25, %v1015_v26 }
 0x1d8   : > { %v1017_v28 = vmul.f32 0.5, %v1016_v27 }
 0x1da   : > { %v1018_v29 = vsub.f32 1.5, %v1017_v28 }
 0x1dc   : > { %v1019_v30 = vmul.f32 %v2197_v25, %v1018_v29  ;;  %v2022_v29 = vld [vmem:[#allocation9 + $0x8] sm:$0xff] }
 0x1de   : > { %v1023_v31 = vsel %vm1022_vm5, %v2197_v25, %v1019_v30  ;;  %v2021_v30 = vld [vmem:[#allocation9] sm:$0xff] }
 0x1df   : > { %v1024_v32 = vmul.f32 %v1023_v31, %v1007_v17 }
 0x1e1   : > { %v1025_v33 = vpack.c.bf16 %v1024_v32, %v1024_v32 }
 0x1e3   : > { %1916 = vmatmul.msk.bf16.vlgmr.msra.gmra.mxu1 %vm995_vm1, %v1025_v33 }
 0x260   : > { %v1053_v35 = vpop.f32.mrf.mxu1 }
 0x261   : > { %v1054_v36 = vadd.f32 %v2185_v34, %v1053_v35 }
 0x263   : > { %v1057_v37 = vmax.f32 %v1054_v36, 0.0  ;;  %v1060_v41 = vpack.c.bf16 %v1054_v36, %v1054_v36 }
 0x265   : > { %v1058_v38 = vadd.f32 0.001, %v1057_v37 }
 0x267   : > { %v1059_v39 = vpack.c.bf16 %v1058_v38, %v1058_v38  ;;  %v1115_v45 = vsel %vm1114_vm7, %v1058_v38, 0.0 }
 0x268   : > { %v1055_v40 = vpop.f32.mrf.mxu1  ;;  %v1116_v46 = vrot.slane %v1115_v45, 4 }
 0x269   : > { %1062 = vrot.lane.b32.xlu1 %v1059_v39, %s2656_s4 }
 0x26a   : > { %v1117_v47 = vadd.f32 %v1116_v46, %v1115_v45  ;;  %v2024_v45 = vld [vmem:[%s3082_s11 + $0x8] sm:$0xff]  ;;  %v2023_v46 = vld [vmem:[%s3082_s11] sm:$0xff] }
 0x26c   : > { %v1118_v48 = vrot.slane %v1117_v47, 2 }
 0x26e   : > { %v1119_v49 = vadd.f32 %v1118_v48, %v1117_v47  ;;  %v2187_v47 = vld [vmem:[#allocation10] ss:$0 sm:$0xff] }
 0x270   : > { %v1120_v50 = vrot.slane %v1119_v49, 1 }
 0x271   : > { %1082 = vrot.lane.b32.xlu1 %v1060_v41, %s2657_s15 }
 0x272   : > { %v1121_v51 = vadd.f32 %v1120_v50, %v1119_v49 }
 0x2db   : > { %v1063_v42 = vpop.permute.xlu1 %1062 }
 0x2dc   : > { %1065 = vxpose.xlu2.c.b16.start.end [1/1] (short) (narrow) %v1063_v42, 32 }
 0x2e3   : > { %v1083_v43 = vpop.permute.xlu1 %1082 }
 0x2e4   : > { %v1093_v44 = vsel %vm1091_vm6, %v1083_v43, 0  ;;  %v2026_v43 = vld [vmem:[%s3082_s11 + $0x18] sm:$0xff] }
 0x2e5   : > { %1102 = vmatpush.bf16.msra.mxu2 %v1093_v44  ;;  %1298 = vmatpush.bf16.msra.mxu0 %v2026_v43  ;;  %v2025_v44 = vld [vmem:[%s3082_s11 + $0x10] sm:$0xff] }
 0x2e9   : > { %1299 = vmatpush.bf16.msra.mxu0 %v2025_v44  ;;  %1359 = vmatpush.bf16.msrb.mxu2 %v2028_v12 }
 0x2ed   : > { %1300 = vmatpush.bf16.msra.mxu0 %v2024_v45 }
 0x2f1   : > { %1301 = vmatpush.bf16.msra.mxu0 %v2023_v46 }
 0x355   : > { %1145 = vrot.lane.b32.xlu2 %v1121_v51, %s2656_s4 }
 0x37d   : > { %v1073_v55 = vpop.trf.xlu2 }
 0x37e   : > { %1917 = vmatmul.msk.bf16.vlgmr.msra.gmra.mxu2 %vm1084_vm8, %v1073_v55 }
 0x38d   : > { %v1074_v56 = vpop.trf.xlu2 }
 0x38e   : > { %1918 = vmatmul.msk.bf16.gmra.mxu2 %vm1084_vm8, %v1074_v56 }
 0x3af   : > { %v1146_v60 = vpop.permute.xlu2 %1145 }
 0x3b0   : > { %v1148_v61 = vmul.f32 %v1146_v60, %v1058_v38 }
 0x3b2   : > { %v1149_v62 = vpack.c.bf16 %v1148_v61, %v1148_v61 }
 0x3b4   : > { %1920 = vmatmul.msk.bf16.vlgmr.msrb.gmra.mxu0 %vm995_vm1, %v1149_v62 }
 0x3b5   : > { %1465 = vmatpush.bf16.msrb.mxu0 %v2954_v54  ;;  %v2188_v54 = vld [vmem:[#allocation12] ss:$0 sm:$0xff] }
 0x3b9   : > { %1466 = vmatpush.bf16.msrb.mxu0 %v2971_v59 }
 0x401   : > { %v1104_v63 = vpop.f32.mrf.mxu2 }
 0x402   : > { %v1122_v8 = vmul.f32 %v1104_v63, %v2962_v57 }
 0x409   : > { %v1106_v0 = vpop.f32.mrf.mxu2 }
 0x40a   : > { %v1123_v6 = vmul.f32 %v1106_v0, %v2967_v58 }
 0x40c   : > { %v1126_v9 = vpack.c.bf16 %v1123_v6, %v1122_v8 }
 0x411   : > { %v1109_v1 = vpop.f32.mrf.mxu2 }
 0x412   : > { %v1124_v4 = vmul.f32 %v1109_v1, %v2945_v52 }
 0x419   : > { %v1111_v2 = vpop.f32.mrf.mxu2 }
 0x41a   : > { %v1125_v5 = vmul.f32 %v1111_v2, %v2950_v53 }
 0x41c   : > { %v1127_v7 = vpack.c.bf16 %v1125_v5, %v1124_v4 }
 0x41e   : > { %1137 = vmatpush.bf16.msra.mxu3 %v1127_v7 }
 0x422   : > { %1138 = vmatpush.bf16.msra.mxu3 %v1126_v9 }
 0x425   : > { %1919 = vmatmul.msk.bf16.vlgmr.msra.gmra.mxu3 %vm995_vm1, %v1059_v39 }
 0x426   : > { %1249 = vmatpush.bf16.msrb.mxu3 %v2022_v29 }
 0x42a   : > { %1250 = vmatpush.bf16.msrb.mxu3 %v2021_v30 }
 0x431   : > { %v1164_v10 = vpop.f32.mrf.mxu0 }
 0x432   : > { %2198 = vrcp.f32 %v1164_v10 }
 0x438   : > { %v2199_v13 = vpop.eup %2198 }
 0x439   : > { %v1166_v11 = vpop.f32.mrf.mxu0 }
 0x4a8   : > { %v1140_v15 = vpop.f32.mrf.mxu3 }
 0x4a9   : > { %v1169_v16 = vmul.f32 %v2199_v13, %v1140_v15  ;;  %v2027_v13 = vld [vmem:[#allocation13] sm:$0xff] }
 0x4aa   : > { %1360 = vmatpush.bf16.msrb.mxu2 %v2027_v13 }
 0x4ab   : > { %v1170_v17 = vpack.c.bf16 %v1169_v16, %v1169_v16 }
 0x4ad   : > { %1929 = vmatmul.msk.bf16.vlgmr.msrb.gmra.mxu1 %vm995_vm1, %v1170_v17 }
 0x4b0   : > { %v1142_v18 = vpop.f32.mrf.mxu3 }
 0x52a   : > { %v1198_v20 = vpop.f32.mrf.mxu1 }
 0x52b   : > { %v1199_v21 = vadd.f32 %v2186_v19, %v1198_v20 }
 0x52d   : > { %v1202_v22 = vsel %vm995_vm1, %v1199_v21, 0.0 }
 0x52e   : > { %1203 = vadd.xlane.f32.xlu0 %v1202_v22 }
 0x532   : > { %v1200_v23 = vpop.f32.mrf.mxu1 }
 0x5a1   : > { %v1204_v24 = vpop.xlane.xlu0 %1203 }
 0x5a2   : > { %v1205_v25 = vmul.f32 %v1204_v24, %v2925_v14 }
 0x5a4   : > { %v1206_v26 = vsub.f32 %v1199_v21, %v1205_v25 }
 0x5a6   : > { %v1207_v27 = vmul.f32 %v1206_v26, %v1206_v26 }
 0x5a8   : > { %v1208_v28 = vsel %vm995_vm1, %v1207_v27, 0.0  ;;  %v2189_v27 = vld [vmem:[#allocation15] ss:$0 sm:$0xff] }
 0x5a9   : > { %1209 = vadd.xlane.f32.xlu1 %v1208_v28 }
 0x61c   : > { %v1210_v31 = vpop.xlane.xlu1 %1209 }
 0x61d   : > { %v1211_v32 = vmul.f32 %v1210_v31, %v2925_v14 }
 0x61f   : > { %v1212_v33 = vadd.f32 1e-05, %v1211_v32 }
 0x621   : > { %2200 = vrsqrt.f32 %v1212_v33  ;;  %vm1219_vm10 = vweird.f32 %v1212_v33 }
 0x627   : > { %v2201_v34 = vpop.eup %2200 }
 0x628   : > { %v1214_v35 = vmul.f32 %v2201_v34, %v1212_v33  ;;  %vm1220_vm9 = vweird.f32 %v2201_v34 }
 0x629   : > { %vm1221_vm11 = vmor %vm1219_vm10, %vm1220_vm9 }
 0x62a   : > { %v1215_v36 = vmul.f32 %v2201_v34, %v1214_v35 }
 0x62c   : > { %v1216_v37 = vmul.f32 0.5, %v1215_v36 }
 0x62e   : > { %v1217_v38 = vsub.f32 1.5, %v1216_v37 }
 0x630   : > { %v1218_v39 = vmul.f32 %v2201_v34, %v1217_v38 }
 0x632   : > { %v1222_v40 = vsel %vm1221_vm11, %v2201_v34, %v1218_v39 }
 0x633   : > { %v1223_v41 = vmul.f32 %v1222_v40, %v1206_v26 }
 0x635   : > { %v1224_v42 = vpack.c.bf16 %v1223_v41, %v1223_v41 }
 0x637   : > { %1938 = vmatmul.msk.bf16.vlgmr.msrb.gmra.mxu3 %vm995_vm1, %v1224_v42 }
 0x6ba   : > { %v1252_v48 = vpop.f32.mrf.mxu3 }
 0x6bb   : > { %v1253_v49 = vadd.f32 %v2187_v47, %v1252_v48 }
 0x6bd   : > { %v1256_v50 = vmul.f32 %v1253_v49, %v1253_v49 }
 0x6bf   : > { %v1257_v51 = vmul.f32 %v1256_v50, %v1253_v49 }
 0x6c1   : > { %v1258_v55 = vmul.f32 0.044715, %v1257_v51 }
 0x6c2   : > { %v1254_v56 = vpop.f32.mrf.mxu3 }
 0x6c3   : > { %v1259_v60 = vadd.f32 %v1258_v55, %v1253_v49 }
 0x6c5   : > { %v1260_v61 = vmul.f32 0.7978846, %v1259_v60 }
 0x6c7   : > { %2202 = vtanh.f32 %v1260_v61 }
 0x6cd   : > { %v2203_v62 = vpop.eup %2202 }
 0x6ce   : > { %v1262_v63 = vadd.f32 1.0, %v2203_v62 }
 0x6d0   : > { %v1263_v0 = vmul.f32 0.5, %v1262_v63 }
 0x6d2   : > { %v1264_v1 = vmul.f32 %v1263_v0, %v1253_v49 }
 0x6d4   : > { %v1265_v2 = vpack.c.bf16 %v1264_v1, %v1264_v1 }
 0x6d6   : > { %1955 = vmatmul.msk.bf16.vlgmr.msra.gmra.mxu0 %vm1290_vm12, %v1265_v2 }
 0x753   : > { %v1303_v3 = vpop.f32.mrf.mxu0 }
 0x754   : > { %v1307_v59 = vadd.f32 %v1303_v3, %v1199_v21  ;;  %v2030_v3 = vld [vmem:[#allocation16 + $0x8] sm:$0xff] }
 0x756   : > { %v1311_v4 = vadd.f32 %v2188_v54, %v1307_v59 }
 0x758   : > { %v1312_v5 = vsel %vm995_vm1, %v1311_v4, 0.0 }
 0x759   : > { %1313 = vadd.xlane.f32.xlu0 %v1312_v5 }
 0x75b   : > { %v1305_v6 = vpop.f32.mrf.mxu0 }
 0x7cc   : > { %v1314_v7 = vpop.xlane.xlu0 %1313 }
 0x7cd   : > { %v1315_v8 = vmul.f32 %v1314_v7, %v2925_v14 }
 0x7cf   : > { %v1316_v9 = vsub.f32 %v1311_v4, %v1315_v8 }
 0x7d1   : > { %v1317_v10 = vmul.f32 %v1316_v9, %v1316_v9 }
 0x7d3   : > { %v1318_v11 = vsel %vm995_vm1, %v1317_v10, 0.0  ;;  %v2190_v10 = vld [vmem:[#allocation18] ss:$0 sm:$0xff] }
 0x7d4   : > { %1319 = vadd.xlane.f32.xlu0 %v1318_v11 }
 0x847   : > { %v1320_v15 = vpop.xlane.xlu0 %1319 }
 0x848   : > { %v1321_v16 = vmul.f32 %v1320_v15, %v2925_v14 }
 0x84a   : > { %v1322_v17 = vadd.f32 1e-05, %v1321_v16 }
 0x84c   : > { %2204 = vrsqrt.f32 %v1322_v17  ;;  %vm1329_vm14 = vweird.f32 %v1322_v17 }
 0x852   : > { %v2205_v18 = vpop.eup %2204 }
 0x853   : > { %v1324_v19 = vmul.f32 %v2205_v18, %v1322_v17  ;;  %vm1330_vm13 = vweird.f32 %v2205_v18 }
 0x854   : > { %vm1331_vm15 = vmor %vm1329_vm14, %vm1330_vm13 }
 0x855   : > { %v1325_v20 = vmul.f32 %v2205_v18, %v1324_v19 }
 0x857   : > { %v1326_v21 = vmul.f32 0.5, %v1325_v20 }
 0x859   : > { %v1327_v22 = vsub.f32 1.5, %v1326_v21  ;;  %v2032_v21 = vld [vmem:[#allocation19 + $0x8] sm:$0xff] }
 0x85a   : > { %1574 = vmatpush.bf16.msra.mxu0 %v2032_v21 }
 0x85b   : > { %v1328_v23 = vmul.f32 %v2205_v18, %v1327_v22  ;;  %v2031_v22 = vld [vmem:[#allocation19] sm:$0xff] }
 0x85d   : > { %v1332_v24 = vsel %vm1331_vm15, %v2205_v18, %v1328_v23 }
 0x85e   : > { %v1333_v25 = vmul.f32 %v1332_v24, %v1316_v9  ;;  %1575 = vmatpush.bf16.msra.mxu0 %v2031_v22 }
 0x860   : > { %v1334_v26 = vpack.c.bf16 %v1333_v25, %v1333_v25 }
 0x862   : > { %1964 = vmatmul.msk.bf16.vlgmr.msrb.gmra.mxu2 %vm995_vm1, %v1334_v26 }
 0x8e5   : > { %v1362_v28 = vpop.f32.mrf.mxu2 }
 0x8e6   : > { %v1363_v29 = vadd.f32 %v2189_v27, %v1362_v28 }
 0x8e8   : > { %v1366_v30 = vmax.f32 %v1363_v29, 0.0  ;;  %v1369_v31 = vpack.c.bf16 %v1363_v29, %v1363_v29 }
 0x8ea   : > { %v1367_v32 = vadd.f32 0.001, %v1366_v30  ;;  %1391 = vrot.lane.b32.xlu1 %v1369_v31, %s2657_s15 }
 0x8ec   : > { %v1421_v33 = vsel %vm1114_vm7, %v1367_v32, 0.0  ;;  %v1368_v34 = vpack.c.bf16 %v1367_v32, %v1367_v32 }
 0x8ed   : > { %v1422_v35 = vrot.slane %v1421_v33, 4  ;;  %v1364_v36 = vpop.f32.mrf.mxu2 }
 0x8ee   : > { %1371 = vrot.lane.b32.xlu0 %v1368_v34, %s2656_s4  ;;  %v2035_v36 = vld [vmem:[%s3090_s19 + $0x10] sm:$0xff] }
 0x8ef   : > { %v1423_v37 = vadd.f32 %v1422_v35, %v1421_v33  ;;  %v2036_v35 = vld [vmem:[%s3090_s19 + $0x18] sm:$0xff] }
 0x8f1   : > { %v1424_v38 = vrot.slane %v1423_v37, 2 }
 0x8f3   : > { %v1425_v39 = vadd.f32 %v1424_v38, %v1423_v37  ;;  %v2034_v37 = vld [vmem:[%s3090_s19 + $0x8] sm:$0xff]  ;;  %v2033_v38 = vld [vmem:[%s3090_s19] sm:$0xff] }
 0x8f5   : > { %v1426_v40 = vrot.slane %v1425_v39, 1 }
 0x8f7   : > { %v1427_v41 = vadd.f32 %v1426_v40, %v1425_v39  ;;  %v2191_v39 = vld [vmem:[#allocation21] ss:$0 sm:$0xff] }
 0x8f9   : > { %1451 = vrot.lane.b32.xlu1 %v1427_v41, %s2656_s4 }
 0x95c   : > { %v1392_v42 = vpop.permute.xlu1 %1391 }
 0x95d   : > { %v1400_v43 = vsel %vm1091_vm6, %v1392_v42, 0 }
 0x95e   : > { %1409 = vmatpush.bf16.msra.mxu1 %v1400_v43 }
 0x960   : > { %v1372_v44 = vpop.permute.xlu0 %1371 }
 0x961   : > { %1374 = vxpose.xlu0.c.b16.start.end [1/1] (short) (narrow) %v1372_v44, 32 }
 0x96b   : > { %v1452_v45 = vpop.permute.xlu1 %1451 }
 0x96c   : > { %v1454_v46 = vmul.f32 %v1452_v45, %v1367_v32 }
 0x96e   : > { %v1455_v47 = vpack.c.bf16 %v1454_v46, %v1454_v46 }
 0x970   : > { %1968 = vmatmul.msk.bf16.vlgmr.msrb.gmra.mxu0 %vm995_vm1, %v1455_v47 }
 0x9ed   : > { %v1468_v48 = vpop.f32.mrf.mxu0 }
 0x9ee   : > { %2206 = vrcp.f32 %v1468_v48 }
 0x9f4   : > { %v2207_v59 = vpop.eup %2206 }
 0x9f5   : > { %v1470_v49 = vpop.f32.mrf.mxu0 }
 0xa0d   : > { %v1382_v50 = vpop.trf.xlu0 }
 0xa0e   : > { %1965 = vmatmul.msk.bf16.vlgmr.msra.gmra.mxu1 %vm1084_vm8, %v1382_v50 }
 0xa1d   : > { %v1383_v51 = vpop.trf.xlu0 }
 0xa1e   : > { %1966 = vmatmul.msk.bf16.gmra.mxu1 %vm1084_vm8, %v1383_v51 }
 0xa8b   : > { %v1411_v55 = vpop.f32.mrf.mxu1 }
 0xa8c   : > { %v1428_v2 = vmul.f32 %v1411_v55, %v2962_v57  ;;  %v2029_v57 = vld [vmem:[#allocation16] sm:$0xff] }
 0xa93   : > { %v1413_v56 = vpop.f32.mrf.mxu1 }
 0xa94   : > { %v1429_v0 = vmul.f32 %v1413_v56, %v2967_v58  ;;  %v2192_v56 = vld [vmem:[%s3091_s20] ss:$0 sm:$0xff] }
 0xa96   : > { %v1432_v54 = vpack.c.bf16 %v1429_v0, %v1428_v2 }
 0xa9b   : > { %v1416_v60 = vpop.f32.mrf.mxu1 }
 0xa9c   : > { %v1430_v62 = vmul.f32 %v1416_v60, %v2945_v52 }
 0xaa3   : > { %v1418_v61 = vpop.f32.mrf.mxu1 }
 0xaa4   : > { %v1431_v63 = vmul.f32 %v1418_v61, %v2950_v53  ;;  %v913_v53 = vld [vmem:[#allocation4] sm:$0x7] }
 0xaa6   : > { %v1433_v1 = vpack.c.bf16 %v1431_v63, %v1430_v62 }
 0xaa8   : > { %1443 = vmatpush.bf16.msra.mxu3 %v1433_v1 }
 0xaac   : > { %1444 = vmatpush.bf16.msra.mxu3 %v1432_v54 }
 0xaaf   : > { %1967 = vmatmul.msk.bf16.vlgmr.msra.gmra.mxu3 %vm995_vm1, %v1368_v34 }
 0xab0   : > { %1519 = vmatpush.bf16.msrb.mxu3 %v2030_v3 }
 0xab4   : > { %1520 = vmatpush.bf16.msrb.mxu3 %v2029_v57 }
 0xb32   : > { %v1446_v4 = vpop.f32.mrf.mxu3 }
 0xb33   : > { %v1473_v5 = vmul.f32 %v2207_v59, %v1446_v4  ;;  %v2038_v4 = vld [vmem:[%s3092_s21 + $0x8] sm:$0xff] }
 0xb34   : > { %1683 = vmatpush.bf16.msrb.mxu1 %v2038_v4 }
 0xb35   : > { %v1474_v6 = vpack.c.bf16 %v1473_v5, %v1473_v5  ;;  %v2037_v5 = vld [vmem:[%s3092_s21] sm:$0xff] }
 0xb37   : > { %v1479_v52 = vsel %vm1091_vm6, %v1474_v6, 0 }
 0xb38   : > { %1488 = vmatpush.bf16.msra.mxu2 %v1479_v52  ;;  %1684 = vmatpush.bf16.msrb.mxu1 %v2037_v5 }
 0xb3a   : > { %v1448_v58 = vpop.f32.mrf.mxu3 }
 0xb3b   : > { %1969 = vmatmul.msk.bf16.vlgmr.msra.gmra.mxu2 %vm1084_vm8, %v913_v53 }
 0xb3c   : > { %1622 = vmatpush.bf16.msrb.mxu2 %v2036_v35 }
 0xb40   : > { %1623 = vmatpush.bf16.msrb.mxu2 %v2035_v36 }
 0xb44   : > { %1624 = vmatpush.bf16.msrb.mxu2 %v2034_v37 }
 0xb48   : > { %1625 = vmatpush.bf16.msrb.mxu2 %v2033_v38 }
 0xbbe   : > { %v1490_v7 = vpop.f32.mrf.mxu2 }
 0xbbf   : > { %v1494_v8 = vpack.c.bf16 %v1490_v7, %v1490_v7 }
 0xbc1   : > { %1978 = vmatmul.msk.bf16.vlgmr.msrb.gmra.mxu3 %vm995_vm1, %v1494_v8 }
 0xbc6   : > { %v1492_v9 = vpop.f32.mrf.mxu2 }
 0xc44   : > { %v1522_v11 = vpop.f32.mrf.mxu3 }
 0xc45   : > { %v1523_v12 = vadd.f32 %v2190_v10, %v1522_v11 }
 0xc47   : > { %v1527_v13 = vsel %vm1526_vm0, %v1523_v12, 0.0 }
 0xc48   : > { %1528 = vadd.xlane.f32.xlu1 %v1527_v13 }
 0xc4c   : > { %v1524_v15 = vpop.f32.mrf.mxu3 }
 0xcbb   : > { %v1529_v16 = vpop.xlane.xlu1 %1528 }
 0xcbc   : > { %v1530_v17 = vmul.f32 %v1529_v16, %v2925_v14 }
 0xcbe   : > { %v1531_v18 = vsub.f32 %v1523_v12, %v1530_v17 }
 0xcc0   : > { %v1532_v19 = vmul.f32 %v1531_v18, %v1531_v18 }
 0xcc2   : > { %v1533_v20 = vsel %vm1526_vm0, %v1532_v19, 0.0 }
 0xcc3   : > { %1534 = vadd.xlane.f32.xlu0 %v1533_v20 }
 0xd36   : > { %v1535_v23 = vpop.xlane.xlu0 %1534 }
 0xd37   : > { %v1536_v24 = vmul.f32 %v1535_v23, %v2925_v14 }
 0xd39   : > { %v1537_v25 = vadd.f32 1e-05, %v1536_v24 }
 0xd3b   : > { %2208 = vrsqrt.f32 %v1537_v25  ;;  %vm1544_vm3 = vweird.f32 %v1537_v25 }
 0xd41   : > { %v2209_v26 = vpop.eup %2208 }
 0xd42   : > { %v1539_v27 = vmul.f32 %v2209_v26, %v1537_v25  ;;  %vm1545_vm2 = vweird.f32 %v2209_v26 }
 0xd43   : > { %vm1546_vm4 = vmor %vm1544_vm3, %vm1545_vm2 }
 0xd44   : > { %v1540_v28 = vmul.f32 %v2209_v26, %v1539_v27 }
 0xd46   : > { %v1541_v29 = vmul.f32 0.5, %v1540_v28 }
 0xd48   : > { %v1542_v30 = vsub.f32 1.5, %v1541_v29 }
 0xd4a   : > { %v1543_v31 = vmul.f32 %v2209_v26, %v1542_v30 }
 0xd4c   : > { %v1547_v32 = vsel %vm1546_vm4, %v2209_v26, %v1543_v31 }
 0xd4d   : > { %v1548_v33 = vmul.f32 %v1547_v32, %v1531_v18 }
 0xd4f   : > { %v1549_v34 = vpack.c.bf16 %v1548_v33, %v1548_v33 }
 0xd51   : > { %1987 = vmatmul.msk.bf16.vlgmr.msra.gmra.mxu0 %vm995_vm1, %v1549_v34 }
 0xdce   : > { %v1577_v40 = vpop.f32.mrf.mxu0 }
 0xdcf   : > { %v1578_v41 = vadd.f32 %v2191_v39, %v1577_v40 }
 0xdd1   : > { %v1581_v42 = vmul.f32 %v1578_v41, %v1578_v41 }
 0xdd3   : > { %v1582_v43 = vmul.f32 %v1581_v42, %v1578_v41 }
 0xdd5   : > { %v1583_v44 = vmul.f32 0.044715, %v1582_v43 }
 0xdd6   : > { %v1579_v45 = vpop.f32.mrf.mxu0 }
 0xdd7   : > { %v1584_v46 = vadd.f32 %v1583_v44, %v1578_v41 }
 0xdd9   : > { %v1585_v47 = vmul.f32 0.7978846, %v1584_v46 }
 0xddb   : > { %2210 = vtanh.f32 %v1585_v47 }
 0xde1   : > { %v2211_v48 = vpop.eup %2210 }
 0xde2   : > { %v1587_v49 = vadd.f32 1.0, %v2211_v48 }
 0xde4   : > { %v1588_v50 = vmul.f32 0.5, %v1587_v49 }
 0xde6   : > { %v1589_v51 = vmul.f32 %v1588_v50, %v1578_v41 }
 0xde8   : > { %v1590_v55 = vpack.c.bf16 %v1589_v51, %v1589_v51 }
 0xdea   : > { %2004 = vmatmul.msk.bf16.vlgmr.msrb.gmra.mxu2 %vm1290_vm12, %v1590_v55 }
 0xe6d   : > { %v1627_v60 = vpop.f32.mrf.mxu2 }
 0xe6e   : > { %v1631_v61 = vadd.f32 %v1627_v60, %v1523_v12 }
 0xe70   : > { %v1635_v62 = vadd.f32 %v2192_v56, %v1631_v61 }
 0xe72   : > { %v1636_v63 = vsel %vm1526_vm0, %v1635_v62, 0.0 }
 0xe73   : > { %1637 = vadd.xlane.f32.xlu2 %v1636_v63 }
 0xe75   : > { %v1629_v0 = vpop.f32.mrf.mxu2 }
 0xee6   : > { %v1638_v1 = vpop.xlane.xlu2 %1637 }
 0xee7   : > { %v1639_v2 = vmul.f32 %v1638_v1, %v2925_v14 }
 0xee9   : > { %v1640_v54 = vsub.f32 %v1635_v62, %v1639_v2 }
 0xeeb   : > { %v1641_v3 = vmul.f32 %v1640_v54, %v1640_v54 }
 0xeed   : > { %v1642_v59 = vsel %vm1526_vm0, %v1641_v3, 0.0 }
 0xeee   : > { %1643 = vadd.xlane.f32.xlu1 %v1642_v59 }
 0xf61   : > { %v1644_v6 = vpop.xlane.xlu1 %1643 }
 0xf62   : > { %v1645_v52 = vmul.f32 %v1644_v6, %v2925_v14  ;;  %v2193_v14 = vld [vmem:[%s3093_s22] ss:$0 sm:$0xff] }
 0xf64   : > { %v1646_v53 = vadd.f32 1e-05, %v1645_v52 }
 0xf66   : > { %2212 = vrsqrt.f32 %v1646_v53  ;;  %vm1653_vm6 = vweird.f32 %v1646_v53 }
 0xf6c   : > { %v2213_v58 = vpop.eup %2212 }
 0xf6d   : > { %v1648_v57 = vmul.f32 %v2213_v58, %v1646_v53  ;;  %vm1654_vm5 = vweird.f32 %v2213_v58 }
 0xf6e   : > { %vm1655_vm7 = vmor %vm1653_vm6, %vm1654_vm5 }
 0xf6f   : > { %v1649_v7 = vmul.f32 %v2213_v58, %v1648_v57 }
 0xf71   : > { %v1650_v8 = vmul.f32 0.5, %v1649_v7 }
 0xf73   : > { %v1651_v9 = vsub.f32 1.5, %v1650_v8 }
 0xf75   : > { %v1652_v10 = vmul.f32 %v2213_v58, %v1651_v9 }
 0xf77   : > { %v1656_v11 = vsel %vm1655_vm7, %v2213_v58, %v1652_v10 }
 0xf78   : > { %v1657_v12 = vmul.f32 %v1656_v11, %v1640_v54 }
 0xf7a   : > { %v1658_v13 = vpack.c.bf16 %v1657_v12, %v1657_v12 }
 0xf7c   : > { %2013 = vmatmul.msk.bf16.vlgmr.msrb.gmra.mxu1 %vm995_vm1, %v1658_v13 }
 0xff9   : > { %v1686_v15 = vpop.f32.mrf.mxu1 }
 0xffa   : > { %v1687_v16 = vadd.f32 %v2193_v14, %v1686_v15 }
 0xffc   : > { %1690 = vst [vmem:[%s904_s6] sm:$0x3f] %v1687_v16 }
0x1001   : > { %v1688_v17 = vpop.f32.mrf.mxu1 }
0x1002 PF: > { %s3126_s28 = sld [smem:[#allocation29_spill]] }
0x1008   : > { %s40_s4 = sadd.s32 1, %s3126_s28  }
0x1009   : > { %p37_p7 = scmp.ge.s32.totalorder %s40_s4, 4  }
0x100b   :  { %39 = sbr.rel (!%p37_p7) target bundleno = 20 (0x14), region = 195 }
0x1010   :  { %1710 = vsyncpa [#allocation3], 1 }
0x1011   :  { %1712 = vsyncpa [#allocation3 + $0x1], 1 }
0x1012   :  { %1713 = vsyncpa [#allocation5], 1 }
0x1013   :  { %1714 = vsyncpa [#allocation8], 1 }
0x1014   :  { %1715 = vsyncpa [#allocation11], 1 }
0x1015   :  { %1716 = vsyncpa [#allocation14], 1 }
0x1016   :  { %1717 = vsyncpa [#allocation17], 1 }
0x1017   :  { %1718 = vsyncpa [#allocation20], 1 }

</bundles_post_ra>
